<compile_context>
chip_gen: v7x
topology: tpu7x:2x2x1
jax: 0.10.0
libtpu: 0.0.40
codegen_flags: <defaults>
</compile_context>

<pallas_src>
import functools
import math

import jax
import jax.numpy as jnp
import numpy as np
from jax.experimental import pallas as pl
from jax.experimental.pallas import tpu as pltpu

LOG_2PI = math.log(2.0 * math.pi)
EPS_EVAL = 1e-6
EPS_RESP = 1e-6
CLAMP_MIN = 1e-10


def _num_parallel_tiles():
    """2 tiles on v7x (2 TensorCores/chip), 1 tile elsewhere."""
    try:
        kind = jax.devices()[0].device_kind.lower()
    except Exception:
        return 1
    return 2 if ("v7" in kind or "7x" in kind) else 1


def _make_e_step_kernel(g, logtot_row):
    """Kernel factory (g, logtot_row are Python ints, baked in at trace time)."""

    def kernel(xa_ref, vt_ref, lognorm_ref, ind_ref, out_ref):
        # xa_ref: (D+1, TN) samples on lanes, last row == 1.0
        # vt_ref: (G*K, D+1) = [scaled eigvecs^T | -mean @ scaled eigvecs]
        xa = xa_ref[...]
        # Whitened, centered projections for every component in ONE MXU matmul.
        y = jnp.dot(vt_ref[...], xa, preferred_element_type=jnp.float32)   # (G*K, TN)
        sq = y * y
        # Per-component Mahalanobis^2 via block-indicator matmul (MXU).
        maha = jnp.dot(ind_ref[...], sq,
                       preferred_element_type=jnp.float32)                 # (GP, TN)
        # weighted likelihood = mix_g * N(x | g); log-normalizer precomputed.
        w = jnp.exp(lognorm_ref[...] - 0.5 * maha)                         # (GP, TN)
        total = jnp.sum(w, axis=0, keepdims=True)                          # (1, TN)
        inv = pl.reciprocal(total + EPS_RESP)                              # one EUP row
        resp = w * inv                                                     # (GP, TN)
        logtot = jnp.log(jnp.maximum(total, CLAMP_MIN))                    # (1, TN)
        # Pack resp (rows 0..g-1) and the per-sample log-total (row g) into a
        # single lane-dense (GP, TN) slab -> unmasked full-sublane stores.
        row = jax.lax.broadcasted_iota(jnp.int32, resp.shape, 0)
        out_ref[...] = jnp.where(row == logtot_row, logtot, resp)

    return kernel


@functools.partial(jax.jit, static_argnames=("tn",))
def _gmm_e_step_jit(x, means, eigenvectors, eigenvalues, mixing_coeffs, *, tn):
    x = x.astype(jnp.float32)
    n, d = x.shape
    g, _, k = eigenvectors.shape
    gp = ((g + 1 + 7) // 8) * 8            # pad components to full sublanes,
                                           # keeping one spare row for log-total

    # ---- loop-invariant precompute (fused into the jit, hoisted off kernel) --
    evals_eps = eigenvalues.astype(jnp.float32) + EPS_EVAL                # (G, K)
    inv_sqrt = jax.lax.rsqrt(evals_eps)                                   # (G, K)
    scaled_v = eigenvectors.astype(jnp.float32) * inv_sqrt[:, None, :]    # (G, D, K)
    vt_all = jnp.transpose(scaled_v, (0, 2, 1)).reshape(g * k, d)         # (G*K, D)
    offset = jnp.einsum('gd,gdk->gk', means.astype(jnp.float32),
                        scaled_v).reshape(g * k, 1)                       # (G*K, 1)
    vt_aug = jnp.concatenate([vt_all, -offset], axis=1)                   # (G*K, D+1)

    log_norm = (jnp.log(mixing_coeffs.astype(jnp.float32))
                - 0.5 * (d * LOG_2PI + jnp.sum(jnp.log(evals_eps), axis=1)))  # (G,)
    log_norm_p = jnp.full((gp, 1), -1e30, dtype=jnp.float32)
    log_norm_p = log_norm_p.at[:g, 0].set(log_norm)                       # (GP, 1)

    ind = jnp.zeros((gp, g * k), dtype=jnp.float32)
    ind = ind.at[:g, :].set(jnp.repeat(jnp.eye(g, dtype=jnp.float32), k, axis=1))

    # samples on the lane axis, plus a ones row so the offset rides the matmul
    x_aug_t = jnp.concatenate([x.T, jnp.ones((1, n), jnp.float32)], axis=0)  # (D+1, N)

    kernel = _make_e_step_kernel(g, logtot_row=g)

    out = pl.pallas_call(
        kernel,
        out_shape=jax.ShapeDtypeStruct((gp, n), jnp.float32),
        grid_spec=pltpu.PrefetchScalarGridSpec(
            num_scalar_prefetch=0,
            grid=(n // tn,),
            in_specs=[
                pl.BlockSpec((d + 1, tn), lambda i: (0, i)),     # augmented x^T tile
                pl.BlockSpec((g * k, d + 1), lambda i: (0, 0)),  # [V_s^T | -offset]
                pl.BlockSpec((gp, 1), lambda i: (0, 0)),         # log normalizers
                pl.BlockSpec((gp, g * k), lambda i: (0, 0)),     # block indicator
            ],
            out_specs=pl.BlockSpec((gp, tn), lambda i: (0, i)),  # resp rows + logtot row
        ),
        compiler_params=pltpu.CompilerParams(
            dimension_semantics=("parallel",)),
    )(x_aug_t, vt_aug, log_norm_p, ind)

    responsibilities = out[:g, :].T           # (N, G) — module's e_step layout
    log_likelihood = jnp.sum(out[g, :])       # per-tile rows are disjoint: race-free
    return responsibilities, log_likelihood


def gmm_e_step(x, means, eigenvectors, eigenvalues, mixing_coeffs, tn=None):
    """Pallas-backed ComponentGMM.e_step -> (responsibilities [N, G], log_lik)."""
    n = x.shape[0]
    if tn is None:
        tiles = _num_parallel_tiles()
        if tiles > 1 and n % tiles == 0 and (n // tiles) % 128 == 0:
            tn = n // tiles          # one tile per TensorCore on v7x
        else:
            tn = n                   # single grid step on v5e / v6e
    assert n % tn == 0, "pad N to a multiple of the sample tile"
    return _gmm_e_step_jit(x, means, eigenvectors, eigenvalues, mixing_coeffs, tn=tn)


def gmm_e_step_reference(x, means, eigenvectors, eigenvalues, mixing_coeffs):
    """Pure-JAX reference with the PyTorch module's exact (unfused) math."""
    n, d = x.shape
    g = means.shape[0]
    weighted = []
    for i in range(g):
        centered = x - means[i][None, :]
        proj = centered @ eigenvectors[i]
        evals = eigenvalues[i] + EPS_EVAL
        maha = jnp.sum(proj ** 2 / evals[None, :], axis=-1, keepdims=True)
        log_det = jnp.sum(jnp.log(evals))
        ll = -0.5 * (d * LOG_2PI + log_det + maha)
        weighted.append(jnp.exp(ll) * mixing_coeffs[i])
    w = jnp.concatenate(weighted, axis=1)
    total = jnp.sum(w, axis=1, keepdims=True)
    resp = w / (total + EPS_RESP)
    ll = jnp.sum(jnp.log(jnp.clip(total, CLAMP_MIN, None)))
    return resp, ll


def init_component_gmm_params(key, n_gaussians, n_dimensions):
    """Deterministic ComponentGMM.__init__ equivalent (randn / QR / abs)."""
    means, evecs, evals = [], [], []
    for _ in range(n_gaussians):
        k_mean, k_mat, k_eval, key = jax.random.split(key, 4)
        mean = jax.random.normal(k_mean, (n_dimensions,), dtype=jnp.float32)
        rand_mat = jax.random.normal(k_mat, (n_dimensions, n_dimensions),
                                     dtype=jnp.float32)
        q, _ = jnp.linalg.qr(rand_mat)
        eig = jnp.abs(jax.random.normal(k_eval, (n_dimensions,),
                                        dtype=jnp.float32))
        means.append(mean)
        evecs.append(q)           # component_count defaults to dimensionality
        evals.append(eig)
    means = jnp.stack(means, axis=0)                       # (G, D)
    evecs = jnp.stack(evecs, axis=0)                       # (G, D, K=D)
    evals = jnp.stack(evals, axis=0)                       # (G, K)
    mix = jnp.ones((n_gaussians,), dtype=jnp.float32) / n_gaussians
    return means, evecs, evals, mix


if __name__ == "__main__":
    N_GAUSSIANS = 4
    N_DIMENSIONS = 16
    N_SAMPLES = 2048

    key = jax.random.PRNGKey(0)
    k_params, k_data = jax.random.split(key)
    means, evecs, evals, mix = init_component_gmm_params(
        k_params, N_GAUSSIANS, N_DIMENSIONS)
    x = jax.random.normal(k_data, (N_SAMPLES, N_DIMENSIONS), dtype=jnp.float32)

    resp, log_lik = gmm_e_step(x, means, evecs, evals, mix)
    resp = jax.block_until_ready(resp)
    log_lik = jax.block_until_ready(log_lik)

    resp_ref, log_lik_ref = gmm_e_step_reference(x, means, evecs, evals, mix)
    np.testing.assert_allclose(np.asarray(resp), np.asarray(resp_ref),
                               rtol=1e-4, atol=1e-5)
    np.testing.assert_allclose(float(log_lik), float(log_lik_ref),
                               rtol=1e-4, atol=1e-3)

    print("KERNEL_OK")
</pallas_src>

<mosaic_0001>
module attributes {stable_mosaic.version = 11 : i64} {
  func.func @kernel(%arg0: i32, %arg1: memref<17x2048xf32, #tpu.memory_space<vmem>>, %arg2: memref<64x17xf32, #tpu.memory_space<vmem>>, %arg3: memref<8x1xf32, #tpu.memory_space<vmem>>, %arg4: memref<8x64xf32, #tpu.memory_space<vmem>>, %arg5: memref<8x2048xf32, #tpu.memory_space<vmem>>) attributes {dimension_semantics = [#tpu.dimension_semantics<parallel>], iteration_bounds = array<i64: 1>, scalar_prefetch = 0 : i64, scratch_operands = 0 : i64, tpu.core_type = #tpu.core_type<tc>, window_params = [{transform_indices = @transform_0, window_bounds = array<i64: 17, 2048>}, {pipeline_mode = #tpu.pipeline_mode<synchronous>, transform_indices = @transform_1, window_bounds = array<i64: 64, 17>}, {pipeline_mode = #tpu.pipeline_mode<synchronous>, transform_indices = @transform_2, window_bounds = array<i64: 8, 1>}, {pipeline_mode = #tpu.pipeline_mode<synchronous>, transform_indices = @transform_3, window_bounds = array<i64: 8, 64>}, {transform_indices = @transform_4, window_bounds = array<i64: 8, 2048>}]} {
    %c0 = arith.constant 0 : index
    %c0_0 = arith.constant 0 : index
    %0 = vector.load %arg1[%c0, %c0_0] : memref<17x2048xf32, #tpu.memory_space<vmem>>, vector<17x2048xf32>
    %c0_1 = arith.constant 0 : index
    %c0_2 = arith.constant 0 : index
    %1 = vector.load %arg2[%c0_1, %c0_2] : memref<64x17xf32, #tpu.memory_space<vmem>>, vector<64x17xf32>
    %cst = arith.constant dense<0.000000e+00> : vector<64x2048xf32>
    %2 = tpu.matmul %1, %0, %cst {dimension_numbers = #tpu.dot_dimension_numbers<[1], [0], [0], [1], [0, 0, 1, 1], [], []>} : vector<64x17xf32>, vector<17x2048xf32>, vector<64x2048xf32> -> vector<64x2048xf32>
    %3 = arith.mulf %2, %2 : vector<64x2048xf32>
    %c0_3 = arith.constant 0 : index
    %c0_4 = arith.constant 0 : index
    %4 = vector.load %arg4[%c0_3, %c0_4] : memref<8x64xf32, #tpu.memory_space<vmem>>, vector<8x64xf32>
    %cst_5 = arith.constant dense<0.000000e+00> : vector<8x2048xf32>
    %5 = tpu.matmul %4, %3, %cst_5 {dimension_numbers = #tpu.dot_dimension_numbers<[1], [0], [0], [1], [0, 0, 1, 1], [], []>} : vector<8x64xf32>, vector<64x2048xf32>, vector<8x2048xf32> -> vector<8x2048xf32>
    %c0_6 = arith.constant 0 : index
    %c0_7 = arith.constant 0 : index
    %6 = vector.load %arg3[%c0_6, %c0_7] : memref<8x1xf32, #tpu.memory_space<vmem>>, vector<8x1xf32>
    %cst_8 = arith.constant 5.000000e-01 : f32
    %7 = vector.broadcast %cst_8 : f32 to vector<8x2048xf32>
    %8 = arith.mulf %7, %5 : vector<8x2048xf32>
    %9 = vector.broadcast %6 : vector<8x1xf32> to vector<8x2048xf32>
    %10 = arith.subf %9, %8 : vector<8x2048xf32>
    %11 = math.exp %10 : vector<8x2048xf32>
    %cst_9 = arith.constant dense<0.000000e+00> : vector<2048xf32>
    %12 = vector.multi_reduction <add>, %11, %cst_9 [0] : vector<8x2048xf32> to vector<2048xf32>
    %13 = vector.shape_cast %12 : vector<2048xf32> to vector<1x2048xf32>
    %cst_10 = arith.constant 9.99999997E-7 : f32
    %14 = vector.broadcast %cst_10 : f32 to vector<1x2048xf32>
    %15 = arith.addf %13, %14 : vector<1x2048xf32>
    %16 = tpu.reciprocal %15 : vector<1x2048xf32> -> vector<1x2048xf32>
    %17 = vector.broadcast %16 : vector<1x2048xf32> to vector<8x2048xf32>
    %18 = arith.mulf %11, %17 : vector<8x2048xf32>
    %cst_11 = arith.constant 1.000000e-10 : f32
    %19 = vector.broadcast %cst_11 : f32 to vector<1x2048xf32>
    %20 = arith.maximumf %13, %19 : vector<1x2048xf32>
    %21 = math.log %20 : vector<1x2048xf32>
    %22 = tpu.iota {dimensions = array<i32: 0>} : vector<8x2048xi32>
    %c4_i32 = arith.constant 4 : i32
    %23 = vector.broadcast %c4_i32 : i32 to vector<8x2048xi32>
    %24 = arith.cmpi eq, %22, %23 : vector<8x2048xi32>
    %25 = vector.shape_cast %21 : vector<1x2048xf32> to vector<1x2048xf32>
    %26 = vector.broadcast %25 : vector<1x2048xf32> to vector<8x2048xf32>
    %27 = arith.select %24, %26, %18 : vector<8x2048xi1>, vector<8x2048xf32>
    %c0_12 = arith.constant 0 : index
    %c0_13 = arith.constant 0 : index
    %28 = vector.load %arg5[%c0_12, %c0_13] : memref<8x2048xf32, #tpu.memory_space<vmem>>, vector<8x2048xf32>
    tpu.vector_store %arg5[%c0_12, %c0_13], %27 {strides = array<i32>} : memref<8x2048xf32, #tpu.memory_space<vmem>>, vector<8x2048xf32>,
    return
  }
  func.func @transform_0(%arg0: i32) -> (i32, i32) {
    %c0_i32 = arith.constant 0 : i32
    %c0_i32_0 = arith.constant 0 : i32
    return %c0_i32, %arg0 : i32, i32
  }
  func.func @transform_1(%arg0: i32) -> (i32, i32) {
    %c0_i32 = arith.constant 0 : i32
    %c0_i32_0 = arith.constant 0 : i32
    %c0_i32_1 = arith.constant 0 : i32
    return %c0_i32, %c0_i32_0 : i32, i32
  }
  func.func @transform_2(%arg0: i32) -> (i32, i32) {
    %c0_i32 = arith.constant 0 : i32
    %c0_i32_0 = arith.constant 0 : i32
    %c0_i32_1 = arith.constant 0 : i32
    return %c0_i32, %c0_i32_0 : i32, i32
  }
  func.func @transform_3(%arg0: i32) -> (i32, i32) {
    %c0_i32 = arith.constant 0 : i32
    %c0_i32_0 = arith.constant 0 : i32
    %c0_i32_1 = arith.constant 0 : i32
    return %c0_i32, %c0_i32_0 : i32, i32
  }
  func.func @transform_4(%arg0: i32) -> (i32, i32) {
    %c0_i32 = arith.constant 0 : i32
    %c0_i32_0 = arith.constant 0 : i32
    return %c0_i32, %arg0 : i32, i32
  }
}

</mosaic_0001>

<bundles_post_ra>
// kernel: neg.9
= control target key start
LH: loop header
LB: loop body
LE: loop exit
PB: predicated region body
PF: predicated region fallthrough
CT: control target
= control target key end

     0   :  { %s24_s0 = inlined_call_operand.vmem [shape: f32[4,16], index: 0, kind: input, shape index: {}]   ;;  %s25_s1 = inlined_call_operand.vmem [shape: f32[4,16], index: 1, kind: output, shape index: {}]  }
   0x1   :  { %v2_v0 = vld [vmem:[%s24_s0] sm:$0xf] }
   0x2   :  { %v5_v1 = vxor.u32 2147483648, %v2_v0 }
   0x4   :  { %7 = vst [vmem:[%s25_s1] sm:$0xf] %v5_v1 }

// kernel: _gmm_e_step_jit.1
= control target key start
LH: loop header
LB: loop body
LE: loop exit
PB: predicated region body
PF: predicated region fallthrough
CT: control target
= control target key end

     0   :  { %v2400_v3 = vmov 0.0   ;;  %vm98_vm0 = vcmask 1040384   ;;  %vm73_vm1 = vcmask 138240   ;;  %vm1180_vm2 = vcmask 523264   ;;  %s3012_s0 = inlined_call_operand.vmem [shape: f32[17,2048], index: 0, kind: input, shape index: {}]   ;;  %s3013_s1 = inlined_call_operand.vmem [shape: f32[64,17], index: 1, kind: input, shape index: {}]   ;;  %s3014_s2 = inlined_call_operand.vmem [shape: f32[8,1], index: 2, kind: input, shape index: {}]   ;;  %s3015_s3 = inlined_call_operand.vmem [shape: f32[8,64], index: 3, kind: input, shape index: {}]   ;;  %s3016_s4 = inlined_call_operand.vmem [shape: f32[8,2048], index: 4, kind: output, shape index: {}]  }
   0x1   :  { %v18_v0 = vld [vmem:[%s3012_s0 + $0x8] sm:$0xff]  ;;  %v20_v2 = vld [vmem:[%s3012_s0 + $0x18] sm:$0xff]  ;;  %211 = vmatprep.mubr.f32.mxu0 %v2400_v3  ;;  %324 = vmatprep.mubr.f32.mxu1 %v2400_v3  ;;  %v17_v6 = vld [vmem:[%s3012_s0] sm:$0xff] }
   0x2   :  { %v34_v1 = vld [vmem:[%s3012_s0 + $0x88] sm:$0xff]  ;;  %v36_v5 = vld [vmem:[%s3012_s0 + $0x98] sm:$0xff]  ;;  %v33_v7 = vld [vmem:[%s3012_s0 + $0x80] sm:$0xff] }
   0x3   :  { %v2141_v4 = vpack.c.bf16 %v34_v1, %v18_v0  ;;  %v2145_v8 = vpack.c.bf16 %v36_v5, %v20_v2  ;;  %v2143_v9 = vpack.c.bf16 %v33_v7, %v17_v6  ;;  %v19_v10 = vld [vmem:[%s3012_s0 + $0x10] sm:$0xff]  ;;  %v50_v12 = vld [vmem:[%s3012_s0 + $0x108] sm:$0x1]  ;;  %v52_v14 = vld [vmem:[%s3012_s0 + $0x118] sm:$0x1] }
   0x4   :  { %v35_v11 = vld [vmem:[%s3012_s0 + $0x90] sm:$0xff]  ;;  %v49_v15 = vld [vmem:[%s3012_s0 + $0x100] sm:$0x1]  ;;  %v22_v18 = vld [vmem:[%s3012_s0 + $0x28] sm:$0xff] }
   0x5   :  { %2142 = vmatprep.subr.bf16.mxu0 %v2141_v4  ;;  %v2147_v13 = vpack.c.bf16 %v35_v11, %v19_v10  ;;  %2146 = vmatprep.subr.bf16.mxu1 %v2145_v8  ;;  %v51_v16 = vld [vmem:[%s3012_s0 + $0x110] sm:$0x1]  ;;  %v2468_v17 = vld [vmem:[%s3013_s1] sm:$0xff]  ;;  %v38_v19 = vld [vmem:[%s3012_s0 + $0xa8] sm:$0xff] }
   0x6   :  { %2144 = vmatpush1.bf16.msra.mxu0 %v2143_v9  ;;  %v24_v20 = vld [vmem:[%s3012_s0 + $0x38] sm:$0xff]  ;;  %v21_v22 = vld [vmem:[%s3012_s0 + $0x20] sm:$0xff]  ;;  %v2149_v23 = vpack.c.bf16 %v38_v19, %v22_v18  ;;  %v23_v25 = vld [vmem:[%s3012_s0 + $0x30] sm:$0xff] }
   0x7   :  { %2148 = vmatpush1.bf16.msra.mxu1 %v2147_v13  ;;  %2053 = vmatprep.subr.msk.mxu0 %vm98_vm0, %v50_v12  ;;  %v40_v21 = vld [vmem:[%s3012_s0 + $0xb8] sm:$0xff]  ;;  %v37_v24 = vld [vmem:[%s3012_s0 + $0xa0] sm:$0xff]  ;;  %v39_v26 = vld [vmem:[%s3012_s0 + $0xb0] sm:$0xff] }
   0x8   :  { %2063 = vmatprep.subr.msk.mxu1 %vm98_vm0, %v52_v14  ;;  %v2153_v27 = vpack.c.bf16 %v40_v21, %v24_v20  ;;  %v2151_v28 = vpack.c.bf16 %v37_v24, %v21_v22  ;;  %v2155_v29 = vpack.c.bf16 %v39_v26, %v23_v25  ;;  %v2505_v30 = vld [vmem:[%s3013_s1 + $0x8] sm:$0xff]  ;;  %v56_v32 = vld [vmem:[%s3012_s0 + $0x138] sm:$0x1]  ;;  %v53_v35 = vld [vmem:[%s3012_s0 + $0x120] sm:$0x1] }
   0x9   :  { %v54_v31 = vld [vmem:[%s3012_s0 + $0x128] sm:$0x1]  ;;  %v28_v36 = vld [vmem:[%s3012_s0 + $0x58] sm:$0xff]  ;;  %v2538_v38 = vld [vmem:[%s3013_s1 + $0x10] sm:$0xff] }
   0xa   :  { %2054 = vmatpush1.msk.msra.mxu0 %vm98_vm0, %v49_v15  ;;  %v26_v33 = vld [vmem:[%s3012_s0 + $0x48] sm:$0xff]  ;;  %v44_v37 = vld [vmem:[%s3012_s0 + $0xd8] sm:$0xff]  ;;  %v55_v39 = vld [vmem:[%s3012_s0 + $0x130] sm:$0x1] }
   0xb   :  { %2064 = vmatpush1.msk.msra.mxu1 %vm98_vm0, %v51_v16  ;;  %2055 = vmatmul.mubr.msk.f32.vlgmr.msra.gmra.mrb[0].mxu0 %vm73_vm1, %v2468_v17  ;;  %v42_v34 = vld [vmem:[%s3012_s0 + $0xc8] sm:$0xff]  ;;  %v2161_v41 = vpack.c.bf16 %v44_v37, %v28_v36  ;;  %v2556_v42 = vld [vmem:[%s3013_s1 + $0x18] sm:$0xff]  ;;  %v2567_v43 = vld [vmem:[%s3013_s1 + $0x20] sm:$0xff] }
   0xc   :  { %2065 = vmatmul.mubr.msk.f32.vlgmr.msra.gmra.mrb[0].mxu1 %vm73_vm1, %v2468_v17  ;;  %2150 = vmatprep.subr.bf16.mxu0 %v2149_v23  ;;  %v2157_v40 = vpack.c.bf16 %v42_v34, %v26_v33  ;;  %v2578_v44 = vld [vmem:[%s3013_s1 + $0x28] sm:$0xff]  ;;  %v2589_v45 = vld [vmem:[%s3013_s1 + $0x30] sm:$0xff]  ;;  %v2600_v46 = vld [vmem:[%s3013_s1 + $0x38] sm:$0xff] }
   0xd   :  { %2154 = vmatprep.subr.bf16.mxu1 %v2153_v27  ;;  %2152 = vmatpush1.bf16.msra.mxu0 %v2151_v28  ;;  %v25_v47 = vld [vmem:[%s3012_s0 + $0x40] sm:$0xff]  ;;  %v27_v49 = vld [vmem:[%s3012_s0 + $0x50] sm:$0xff]  ;;  %v58_v53 = vld [vmem:[%s3012_s0 + $0x148] sm:$0x1] }
   0xe   :  { %2156 = vmatpush1.bf16.msra.mxu1 %v2155_v29  ;;  %217 = vmatprep.mubr.f32.mxu0 %v2400_v3  ;;  %v41_v48 = vld [vmem:[%s3012_s0 + $0xc0] sm:$0xff]  ;;  %v43_v50 = vld [vmem:[%s3012_s0 + $0xd0] sm:$0xff]  ;;  %v30_v54 = vld [vmem:[%s3012_s0 + $0x68] sm:$0xff] }
   0xf   :  { %330 = vmatprep.mubr.f32.mxu1 %v2400_v3  ;;  %2056 = vmatmul.mubr.msk.f32.gmra.mrb[2].mxu0 %vm73_vm1, %v2505_v30  ;;  %v2159_v51 = vpack.c.bf16 %v41_v48, %v25_v47  ;;  %v2163_v52 = vpack.c.bf16 %v43_v50, %v27_v49  ;;  %v46_v55 = vld [vmem:[%s3012_s0 + $0xe8] sm:$0xff]  ;;  %v60_v56 = vld [vmem:[%s3012_s0 + $0x158] sm:$0x1]  ;;  %v57_v59 = vld [vmem:[%s3012_s0 + $0x140] sm:$0x1] }
  0x10   :  { %2066 = vmatmul.mubr.msk.f32.gmra.mrb[2].mxu1 %vm73_vm1, %v2505_v30  ;;  %223 = vmatprep.mubr.f32.mxu0 %v2400_v3  ;;  %v32_v57 = vld [vmem:[%s3012_s0 + $0x78] sm:$0xff]  ;;  %v2165_v60 = vpack.c.bf16 %v46_v55, %v30_v54  ;;  %v59_v61 = vld [vmem:[%s3012_s0 + $0x150] sm:$0x1]  ;;  %v29_v63 = vld [vmem:[%s3012_s0 + $0x60] sm:$0xff] }
  0x11   :  { %336 = vmatprep.mubr.f32.mxu1 %v2400_v3  ;;  %2073 = vmatprep.subr.msk.mxu0 %vm98_vm0, %v54_v31  ;;  %v48_v58 = vld [vmem:[%s3012_s0 + $0xf8] sm:$0xff]  ;;  %v45_v0 = vld [vmem:[%s3012_s0 + $0xe0] sm:$0xff]  ;;  %v31_v1 = vld [vmem:[%s3012_s0 + $0x70] sm:$0xff] }
  0x12   :  { %2083 = vmatprep.subr.msk.mxu1 %vm98_vm0, %v56_v32  ;;  %2074 = vmatpush1.msk.msra.mxu0 %vm98_vm0, %v53_v35  ;;  %v2169_v62 = vpack.c.bf16 %v48_v58, %v32_v57  ;;  %v47_v2 = vld [vmem:[%s3012_s0 + $0xf0] sm:$0xff]  ;;  %v2167_v4 = vpack.c.bf16 %v45_v0, %v29_v63  ;;  %v62_v6 = vld [vmem:[%s3012_s0 + $0x168] sm:$0x1]  ;;  %v64_v7 = vld [vmem:[%s3012_s0 + $0x178] sm:$0x1] }
  0x13   :  { %2057 = vmatmul.mubr.msk.f32.gmra.mrb[4].mxu0 %vm73_vm1, %v2538_v38  ;;  %2084 = vmatpush1.msk.msra.mxu1 %vm98_vm0, %v55_v39  ;;  %v2171_v5 = vpack.c.bf16 %v47_v2, %v31_v1  ;;  %v61_v8 = vld [vmem:[%s3012_s0 + $0x160] sm:$0x1]  ;;  %v63_v9 = vld [vmem:[%s3012_s0 + $0x170] sm:$0x1] }
  0x14   :  { %2067 = vmatmul.mubr.msk.f32.gmra.mrb[4].mxu1 %vm73_vm1, %v2538_v38  ;;  %229 = vmatprep.mubr.f32.mxu0 %v2400_v3  ;;  %v1752_v31 = vld [vmem:[%s3014_s2] sm:$0xff] }
  0x15   :  { %342 = vmatprep.mubr.f32.mxu1 %v2400_v3  ;;  %2158 = vmatprep.subr.bf16.mxu0 %v2157_v40 }
  0x16   :  { %2162 = vmatprep.subr.bf16.mxu1 %v2161_v41 }
  0x17   :  { %2058 = vmatmul.mubr.msk.f32.gmra.mrb[6].mxu0 %vm73_vm1, %v2556_v42 }
  0x18   :  { %2068 = vmatmul.mubr.msk.f32.gmra.mrb[6].mxu1 %vm73_vm1, %v2556_v42  ;;  %235 = vmatprep.mubr.f32.mxu0 %v2400_v3 }
  0x19   :  { %348 = vmatprep.mubr.f32.mxu1 %v2400_v3 }
  0x1b   :  { %2059 = vmatmul.mubr.msk.f32.gmra.mrb[8].mxu0 %vm73_vm1, %v2567_v43 }
  0x1c   :  { %2069 = vmatmul.mubr.msk.f32.gmra.mrb[8].mxu1 %vm73_vm1, %v2567_v43  ;;  %241 = vmatprep.mubr.f32.mxu0 %v2400_v3 }
  0x1d   :  { %354 = vmatprep.mubr.f32.mxu1 %v2400_v3 }
  0x1f   :  { %2060 = vmatmul.mubr.msk.f32.gmra.mrb[10].mxu0 %vm73_vm1, %v2578_v44 }
  0x20   :  { %2070 = vmatmul.mubr.msk.f32.gmra.mrb[10].mxu1 %vm73_vm1, %v2578_v44  ;;  %247 = vmatprep.mubr.f32.mxu0 %v2400_v3 }
  0x21   :  { %360 = vmatprep.mubr.f32.mxu1 %v2400_v3 }
  0x23   :  { %2061 = vmatmul.mubr.msk.f32.gmra.mrb[12].mxu0 %vm73_vm1, %v2589_v45 }
  0x24   :  { %2071 = vmatmul.mubr.msk.f32.gmra.mrb[12].mxu1 %vm73_vm1, %v2589_v45  ;;  %253 = vmatprep.mubr.f32.mxu0 %v2400_v3 }
  0x25   :  { %366 = vmatprep.mubr.f32.mxu1 %v2400_v3 }
  0x27   :  { %2062 = vmatmul.mubr.msk.f32.gmra.mrb[14].mxu0 %vm73_vm1, %v2600_v46 }
  0x28   :  { %2072 = vmatmul.mubr.msk.f32.gmra.mrb[14].mxu1 %vm73_vm1, %v2600_v46  ;;  %437 = vmatprep.mubr.f32.mxu0 %v2400_v3 }
  0x29   :  { %550 = vmatprep.mubr.f32.mxu1 %v2400_v3 }
  0x2b   :  { %2075 = vmatmul.mubr.msk.f32.vlgmr.msra.gmra.mrb[16].mxu0 %vm73_vm1, %v2468_v17 }
  0x2c   :  { %2085 = vmatmul.mubr.msk.f32.vlgmr.msra.gmra.mrb[16].mxu1 %vm73_vm1, %v2468_v17  ;;  %2160 = vmatpush1.bf16.msra.mxu0 %v2159_v51 }
  0x2d   :  { %2164 = vmatpush1.bf16.msra.mxu1 %v2163_v52  ;;  %443 = vmatprep.mubr.f32.mxu0 %v2400_v3 }
  0x2e   :  { %556 = vmatprep.mubr.f32.mxu1 %v2400_v3  ;;  %2093 = vmatprep.subr.msk.mxu0 %vm98_vm0, %v58_v53 }
  0x2f   :  { %2076 = vmatmul.mubr.msk.f32.gmra.mrb[18].mxu0 %vm73_vm1, %v2505_v30  ;;  %2103 = vmatprep.subr.msk.mxu1 %vm98_vm0, %v60_v56 }
  0x30   :  { %2086 = vmatmul.mubr.msk.f32.gmra.mrb[18].mxu1 %vm73_vm1, %v2505_v30  ;;  %449 = vmatprep.mubr.f32.mxu0 %v2400_v3 }
  0x31   :  { %562 = vmatprep.mubr.f32.mxu1 %v2400_v3  ;;  %2094 = vmatpush1.msk.msra.mxu0 %vm98_vm0, %v57_v59 }
  0x32   :  { %2104 = vmatpush1.msk.msra.mxu1 %vm98_vm0, %v59_v61  ;;  %2166 = vmatprep.subr.bf16.mxu0 %v2165_v60 }
  0x33   :  { %2077 = vmatmul.mubr.msk.f32.gmra.mrb[20].mxu0 %vm73_vm1, %v2538_v38  ;;  %2170 = vmatprep.subr.bf16.mxu1 %v2169_v62 }
  0x34   :  { %2087 = vmatmul.mubr.msk.f32.gmra.mrb[20].mxu1 %vm73_vm1, %v2538_v38  ;;  %455 = vmatprep.mubr.f32.mxu0 %v2400_v3 }
  0x35   :  { %568 = vmatprep.mubr.f32.mxu1 %v2400_v3 }
  0x37   :  { %2078 = vmatmul.mubr.msk.f32.gmra.mrb[22].mxu0 %vm73_vm1, %v2556_v42 }
  0x38   :  { %2088 = vmatmul.mubr.msk.f32.gmra.mrb[22].mxu1 %vm73_vm1, %v2556_v42  ;;  %461 = vmatprep.mubr.f32.mxu0 %v2400_v3 }
  0x39   :  { %574 = vmatprep.mubr.f32.mxu1 %v2400_v3 }
  0x3b   :  { %2079 = vmatmul.mubr.msk.f32.gmra.mrb[24].mxu0 %vm73_vm1, %v2567_v43 }
  0x3c   :  { %2089 = vmatmul.mubr.msk.f32.gmra.mrb[24].mxu1 %vm73_vm1, %v2567_v43  ;;  %467 = vmatprep.mubr.f32.mxu0 %v2400_v3 }
  0x3d   :  { %580 = vmatprep.mubr.f32.mxu1 %v2400_v3 }
  0x3f   :  { %2080 = vmatmul.mubr.msk.f32.gmra.mrb[26].mxu0 %vm73_vm1, %v2578_v44 }
  0x40   :  { %2090 = vmatmul.mubr.msk.f32.gmra.mrb[26].mxu1 %vm73_vm1, %v2578_v44  ;;  %473 = vmatprep.mubr.f32.mxu0 %v2400_v3 }
  0x41   :  { %586 = vmatprep.mubr.f32.mxu1 %v2400_v3 }
  0x43   :  { %2081 = vmatmul.mubr.msk.f32.gmra.mrb[28].mxu0 %vm73_vm1, %v2589_v45 }
  0x44   :  { %2091 = vmatmul.mubr.msk.f32.gmra.mrb[28].mxu1 %vm73_vm1, %v2589_v45  ;;  %479 = vmatprep.mubr.f32.mxu0 %v2400_v3 }
  0x45   :  { %592 = vmatprep.mubr.f32.mxu1 %v2400_v3 }
  0x47   :  { %2082 = vmatmul.mubr.msk.f32.gmra.mrb[30].mxu0 %vm73_vm1, %v2600_v46 }
  0x48   :  { %2092 = vmatmul.mubr.msk.f32.gmra.mrb[30].mxu1 %vm73_vm1, %v2600_v46  ;;  %663 = vmatprep.mubr.f32.mxu0 %v2400_v3 }
  0x49   :  { %776 = vmatprep.mubr.f32.mxu1 %v2400_v3 }
  0x4b   :  { %2095 = vmatmul.mubr.msk.f32.vlgmr.msra.gmra.mrb[32].mxu0 %vm73_vm1, %v2468_v17 }
  0x4c   :  { %2105 = vmatmul.mubr.msk.f32.vlgmr.msra.gmra.mrb[32].mxu1 %vm73_vm1, %v2468_v17  ;;  %2168 = vmatpush1.bf16.msra.mxu0 %v2167_v4 }
  0x4d   :  { %2172 = vmatpush1.bf16.msra.mxu1 %v2171_v5  ;;  %669 = vmatprep.mubr.f32.mxu0 %v2400_v3 }
  0x4e   :  { %782 = vmatprep.mubr.f32.mxu1 %v2400_v3  ;;  %2113 = vmatprep.subr.msk.mxu0 %vm98_vm0, %v62_v6 }
  0x4f   :  { %2096 = vmatmul.mubr.msk.f32.gmra.mrb[34].mxu0 %vm73_vm1, %v2505_v30  ;;  %2123 = vmatprep.subr.msk.mxu1 %vm98_vm0, %v64_v7 }
  0x50   :  { %2106 = vmatmul.mubr.msk.f32.gmra.mrb[34].mxu1 %vm73_vm1, %v2505_v30  ;;  %675 = vmatprep.mubr.f32.mxu0 %v2400_v3 }
  0x51   :  { %788 = vmatprep.mubr.f32.mxu1 %v2400_v3  ;;  %2114 = vmatpush1.msk.msra.mxu0 %vm98_vm0, %v61_v8 }
  0x52   :  { %2124 = vmatpush1.msk.msra.mxu1 %vm98_vm0, %v63_v9 }
  0x53   :  { %2097 = vmatmul.mubr.msk.f32.gmra.mrb[36].mxu0 %vm73_vm1, %v2538_v38 }
  0x54   :  { %2107 = vmatmul.mubr.msk.f32.gmra.mrb[36].mxu1 %vm73_vm1, %v2538_v38  ;;  %681 = vmatprep.mubr.f32.mxu0 %v2400_v3 }
  0x55   :  { %794 = vmatprep.mubr.f32.mxu1 %v2400_v3 }
  0x57   :  { %2098 = vmatmul.mubr.msk.f32.gmra.mrb[38].mxu0 %vm73_vm1, %v2556_v42 }
  0x58   :  { %2108 = vmatmul.mubr.msk.f32.gmra.mrb[38].mxu1 %vm73_vm1, %v2556_v42  ;;  %687 = vmatprep.mubr.f32.mxu0 %v2400_v3 }
  0x59   :  { %800 = vmatprep.mubr.f32.mxu1 %v2400_v3 }
  0x5b   :  { %2099 = vmatmul.mubr.msk.f32.gmra.mrb[40].mxu0 %vm73_vm1, %v2567_v43 }
  0x5c   :  { %2109 = vmatmul.mubr.msk.f32.gmra.mrb[40].mxu1 %vm73_vm1, %v2567_v43  ;;  %693 = vmatprep.mubr.f32.mxu0 %v2400_v3 }
  0x5d   :  { %806 = vmatprep.mubr.f32.mxu1 %v2400_v3 }
  0x5f   :  { %2100 = vmatmul.mubr.msk.f32.gmra.mrb[42].mxu0 %vm73_vm1, %v2578_v44 }
  0x60   :  { %2110 = vmatmul.mubr.msk.f32.gmra.mrb[42].mxu1 %vm73_vm1, %v2578_v44  ;;  %699 = vmatprep.mubr.f32.mxu0 %v2400_v3 }
  0x61   :  { %812 = vmatprep.mubr.f32.mxu1 %v2400_v3 }
  0x63   :  { %2101 = vmatmul.mubr.msk.f32.gmra.mrb[44].mxu0 %vm73_vm1, %v2589_v45 }
  0x64   :  { %2111 = vmatmul.mubr.msk.f32.gmra.mrb[44].mxu1 %vm73_vm1, %v2589_v45  ;;  %705 = vmatprep.mubr.f32.mxu0 %v2400_v3 }
  0x65   :  { %818 = vmatprep.mubr.f32.mxu1 %v2400_v3 }
  0x67   :  { %2102 = vmatmul.mubr.msk.f32.gmra.mrb[46].mxu0 %vm73_vm1, %v2600_v46 }
  0x68   :  { %2112 = vmatmul.mubr.msk.f32.gmra.mrb[46].mxu1 %vm73_vm1, %v2600_v46  ;;  %889 = vmatprep.mubr.f32.mxu0 %v2400_v3 }
  0x69   :  { %1002 = vmatprep.mubr.f32.mxu1 %v2400_v3 }
  0x6b   :  { %2115 = vmatmul.mubr.msk.f32.vlgmr.msra.gmra.mrb[48].mxu0 %vm73_vm1, %v2468_v17 }
  0x6c   :  { %2125 = vmatmul.mubr.msk.f32.vlgmr.msra.gmra.mrb[48].mxu1 %vm73_vm1, %v2468_v17  ;;  %895 = vmatprep.mubr.f32.mxu0 %v2400_v3 }
  0x6d   :  { %1008 = vmatprep.mubr.f32.mxu1 %v2400_v3 }
  0x6f   :  { %2116 = vmatmul.mubr.msk.f32.gmra.mrb[50].mxu0 %vm73_vm1, %v2505_v30 }
  0x70   :  { %2126 = vmatmul.mubr.msk.f32.gmra.mrb[50].mxu1 %vm73_vm1, %v2505_v30  ;;  %901 = vmatprep.mubr.f32.mxu0 %v2400_v3  ;;  %v2401_v30 = vmov 0  }
  0x71   :  { %1014 = vmatprep.mubr.f32.mxu1 %v2400_v3  ;;  %2303 = vset.pattern.permute.xlu0 %v2401_v30 }
  0x72   :  { %1771 = vperm.xlu0 %2303, %v1752_v31  }
  0x73   :  { %2117 = vmatmul.mubr.msk.f32.gmra.mrb[52].mxu0 %vm73_vm1, %v2538_v38 }
  0x74   :  { %2127 = vmatmul.mubr.msk.f32.gmra.mrb[52].mxu1 %vm73_vm1, %v2538_v38  ;;  %907 = vmatprep.mubr.f32.mxu0 %v2400_v3 }
  0x75   :  { %1020 = vmatprep.mubr.f32.mxu1 %v2400_v3 }
  0x77   :  { %2118 = vmatmul.mubr.msk.f32.gmra.mrb[54].mxu0 %vm73_vm1, %v2556_v42 }
  0x78   :  { %2128 = vmatmul.mubr.msk.f32.gmra.mrb[54].mxu1 %vm73_vm1, %v2556_v42  ;;  %913 = vmatprep.mubr.f32.mxu0 %v2400_v3 }
  0x79   :  { %1026 = vmatprep.mubr.f32.mxu1 %v2400_v3 }
  0x7b   :  { %2119 = vmatmul.mubr.msk.f32.gmra.mrb[56].mxu0 %vm73_vm1, %v2567_v43 }
  0x7c   :  { %2129 = vmatmul.mubr.msk.f32.gmra.mrb[56].mxu1 %vm73_vm1, %v2567_v43  ;;  %919 = vmatprep.mubr.f32.mxu0 %v2400_v3 }
  0x7d   :  { %1032 = vmatprep.mubr.f32.mxu1 %v2400_v3 }
  0x7f   :  { %2120 = vmatmul.mubr.msk.f32.gmra.mrb[58].mxu0 %vm73_vm1, %v2578_v44 }
  0x80   :  { %2130 = vmatmul.mubr.msk.f32.gmra.mrb[58].mxu1 %vm73_vm1, %v2578_v44  ;;  %925 = vmatprep.mubr.f32.mxu0 %v2400_v3 }
  0x81   :  { %1038 = vmatprep.mubr.f32.mxu1 %v2400_v3 }
  0x83   :  { %2121 = vmatmul.mubr.msk.f32.gmra.mrb[60].mxu0 %vm73_vm1, %v2589_v45 }
  0x84   :  { %2131 = vmatmul.mubr.msk.f32.gmra.mrb[60].mxu1 %vm73_vm1, %v2589_v45  ;;  %931 = vmatprep.mubr.f32.mxu0 %v2400_v3 }
  0x85   :  { %1044 = vmatprep.mubr.f32.mxu1 %v2400_v3 }
  0x87   :  { %2122 = vmatmul.mubr.msk.f32.gmra.mrb[62].mxu0 %vm73_vm1, %v2600_v46 }
  0x88   :  { %2132 = vmatmul.mubr.msk.f32.gmra.mrb[62].mxu1 %vm73_vm1, %v2600_v46  ;;  %1248 = vmatprep.mubr.f32.mxu0 %v2400_v3 }
  0x89   :  { %1319 = vmatprep.mubr.f32.mxu1 %v2400_v3 }
  0xde   :  { %v213_v10 = vpop.f32.mrb[0].mxu0 }
  0xdf   :  { %v326_v11 = vpop.f32.mrb[0].mxu1  ;;  %v215_v12 = vpop.f32.mrb[1].mxu0  ;;  %v1051_v15 = vmul.f32 %v213_v10, %v213_v10 }
  0xe0   :  { %v328_v13 = vpop.f32.mrb[1].mxu1  ;;  %v1053_v19 = vmul.f32 %v326_v11, %v326_v11  ;;  %v1052_v20 = vmul.f32 %v215_v12, %v215_v12 }
  0xe1   :  { %v1054_v24 = vmul.f32 %v328_v13, %v328_v13 }
  0xe2   :  { %v219_v14 = vpop.f32.mrb[2].mxu0 }
  0xe3   :  { %v1067_v16 = vmul.f32 %v219_v14, %v219_v14  ;;  %v332_v17 = vpop.f32.mrb[2].mxu1  ;;  %v221_v18 = vpop.f32.mrb[3].mxu0 }
  0xe4   :  { %v1069_v21 = vmul.f32 %v332_v17, %v332_v17  ;;  %v1068_v22 = vmul.f32 %v221_v18, %v221_v18  ;;  %v334_v23 = vpop.f32.mrb[3].mxu1 }
  0xe5   :  { %v2175_v25 = vpack.c.bf16 %v1067_v16, %v1051_v15  ;;  %v1070_v26 = vmul.f32 %v334_v23, %v334_v23 }
  0xe6   :  { %v2191_v27 = vpack.c.bf16 %v1069_v21, %v1053_v19  ;;  %v2173_v28 = vpack.c.bf16 %v1068_v22, %v1052_v20  ;;  %v225_v29 = vpop.f32.mrb[4].mxu0 }
  0xe7   :  { %v2189_v32 = vpack.c.bf16 %v1070_v26, %v1054_v24  ;;  %v338_v33 = vpop.f32.mrb[4].mxu1  ;;  %v227_v34 = vpop.f32.mrb[5].mxu0  ;;  %v1083_v37 = vmul.f32 %v225_v29, %v225_v29 }
  0xe8   :  { %v340_v35 = vpop.f32.mrb[5].mxu1  ;;  %2174 = vmatprep.subr.bf16.mxu0 %v2173_v28  ;;  %v1085_v41 = vmul.f32 %v338_v33, %v338_v33  ;;  %v1084_v42 = vmul.f32 %v227_v34, %v227_v34  ;;  %v2827_v33 = vld [vmem:[%s3015_s3] sm:$0xff] }
  0xe9   :  { %2190 = vmatprep.subr.bf16.mxu1 %v2189_v32  ;;  %2176 = vmatpush1.bf16.msra.mxu0 %v2175_v25  ;;  %v1086_v46 = vmul.f32 %v340_v35, %v340_v35 }
  0xea   :  { %2192 = vmatpush1.bf16.msra.mxu1 %v2191_v27  ;;  %v231_v36 = vpop.f32.mrb[6].mxu0 }
  0xeb   :  { %v1099_v38 = vmul.f32 %v231_v36, %v231_v36  ;;  %v344_v39 = vpop.f32.mrb[6].mxu1  ;;  %v233_v40 = vpop.f32.mrb[7].mxu0 }
  0xec   :  { %v1101_v43 = vmul.f32 %v344_v39, %v344_v39  ;;  %v1100_v44 = vmul.f32 %v233_v40, %v233_v40  ;;  %v346_v45 = vpop.f32.mrb[7].mxu1 }
  0xed   :  { %v2179_v47 = vpack.c.bf16 %v1099_v38, %v1083_v37  ;;  %v1102_v48 = vmul.f32 %v346_v45, %v346_v45 }
  0xee   :  { %v2195_v49 = vpack.c.bf16 %v1101_v43, %v1085_v41  ;;  %v2177_v50 = vpack.c.bf16 %v1100_v44, %v1084_v42  ;;  %v237_v51 = vpop.f32.mrb[8].mxu0 }
  0xef   :  { %v2193_v52 = vpack.c.bf16 %v1102_v48, %v1086_v46  ;;  %v350_v53 = vpop.f32.mrb[8].mxu1  ;;  %v239_v54 = vpop.f32.mrb[9].mxu0  ;;  %v1115_v57 = vmul.f32 %v237_v51, %v237_v51 }
  0xf0   :  { %v352_v55 = vpop.f32.mrb[9].mxu1  ;;  %2178 = vmatprep.subr.bf16.mxu0 %v2177_v50  ;;  %v1117_v61 = vmul.f32 %v350_v53, %v350_v53  ;;  %v1116_v62 = vmul.f32 %v239_v54, %v239_v54 }
  0xf1   :  { %2194 = vmatprep.subr.bf16.mxu1 %v2193_v52  ;;  %2180 = vmatpush1.bf16.msra.mxu0 %v2179_v47  ;;  %v1118_v2 = vmul.f32 %v352_v55, %v352_v55 }
  0xf2   :  { %2196 = vmatpush1.bf16.msra.mxu1 %v2195_v49  ;;  %v243_v56 = vpop.f32.mrb[10].mxu0 }
  0xf3   :  { %v1131_v58 = vmul.f32 %v243_v56, %v243_v56  ;;  %v356_v59 = vpop.f32.mrb[10].mxu1  ;;  %v245_v60 = vpop.f32.mrb[11].mxu0 }
  0xf4   :  { %v1133_v63 = vmul.f32 %v356_v59, %v356_v59  ;;  %v1132_v0 = vmul.f32 %v245_v60, %v245_v60  ;;  %v358_v1 = vpop.f32.mrb[11].mxu1 }
  0xf5   :  { %v2183_v4 = vpack.c.bf16 %v1131_v58, %v1115_v57  ;;  %v1134_v5 = vmul.f32 %v358_v1, %v358_v1 }
  0xf6   :  { %v2199_v6 = vpack.c.bf16 %v1133_v63, %v1117_v61  ;;  %v2181_v7 = vpack.c.bf16 %v1132_v0, %v1116_v62  ;;  %v249_v8 = vpop.f32.mrb[12].mxu0 }
  0xf7   :  { %v2197_v9 = vpack.c.bf16 %v1134_v5, %v1118_v2  ;;  %v362_v10 = vpop.f32.mrb[12].mxu1  ;;  %v251_v11 = vpop.f32.mrb[13].mxu0  ;;  %v1147_v14 = vmul.f32 %v249_v8, %v249_v8 }
  0xf8   :  { %v364_v12 = vpop.f32.mrb[13].mxu1  ;;  %2182 = vmatprep.subr.bf16.mxu0 %v2181_v7  ;;  %v1149_v18 = vmul.f32 %v362_v10, %v362_v10  ;;  %v1148_v19 = vmul.f32 %v251_v11, %v251_v11 }
  0xf9   :  { %2198 = vmatprep.subr.bf16.mxu1 %v2197_v9  ;;  %2184 = vmatpush1.bf16.msra.mxu0 %v2183_v4  ;;  %v1150_v23 = vmul.f32 %v364_v12, %v364_v12 }
  0xfa   :  { %2200 = vmatpush1.bf16.msra.mxu1 %v2199_v6  ;;  %v255_v13 = vpop.f32.mrb[14].mxu0 }
  0xfb   :  { %v1163_v15 = vmul.f32 %v255_v13, %v255_v13  ;;  %v368_v16 = vpop.f32.mrb[14].mxu1  ;;  %v257_v17 = vpop.f32.mrb[15].mxu0 }
  0xfc   :  { %v1165_v20 = vmul.f32 %v368_v16, %v368_v16  ;;  %v1164_v21 = vmul.f32 %v257_v17, %v257_v17  ;;  %v370_v22 = vpop.f32.mrb[15].mxu1 }
  0xfd   :  { %v2187_v24 = vpack.c.bf16 %v1163_v15, %v1147_v14  ;;  %v1166_v25 = vmul.f32 %v370_v22, %v370_v22 }
  0xfe   :  { %v2203_v26 = vpack.c.bf16 %v1165_v20, %v1149_v18  ;;  %v2185_v27 = vpack.c.bf16 %v1164_v21, %v1148_v19  ;;  %v439_v28 = vpop.f32.mrb[16].mxu0 }
  0xff   :  { %v2201_v29 = vpack.c.bf16 %v1166_v25, %v1150_v23  ;;  %v552_v30 = vpop.f32.mrb[16].mxu1  ;;  %v441_v31 = vpop.f32.mrb[17].mxu0  ;;  %v1055_v35 = vmul.f32 %v439_v28, %v439_v28 }
 0x100   :  { %v554_v32 = vpop.f32.mrb[17].mxu1  ;;  %2186 = vmatprep.subr.bf16.mxu0 %v2185_v27  ;;  %v1057_v39 = vmul.f32 %v552_v30, %v552_v30  ;;  %v1056_v40 = vmul.f32 %v441_v31, %v441_v31 }
 0x101   :  { %2202 = vmatprep.subr.bf16.mxu1 %v2201_v29  ;;  %2188 = vmatpush1.bf16.msra.mxu0 %v2187_v24  ;;  %v1058_v44 = vmul.f32 %v554_v32, %v554_v32 }
 0x102   :  { %2204 = vmatpush1.bf16.msra.mxu1 %v2203_v26  ;;  %v445_v34 = vpop.f32.mrb[18].mxu0 }
 0x103   :  { %v1071_v36 = vmul.f32 %v445_v34, %v445_v34  ;;  %v558_v37 = vpop.f32.mrb[18].mxu1  ;;  %v447_v38 = vpop.f32.mrb[19].mxu0 }
 0x104   :  { %v1073_v41 = vmul.f32 %v558_v37, %v558_v37  ;;  %v1072_v42 = vmul.f32 %v447_v38, %v447_v38  ;;  %v560_v43 = vpop.f32.mrb[19].mxu1  ;;  %2133 = vmatmul.mubr.msk.f32.vlgmr.msra.gmra.mrb[64].mxu0 %vm1180_vm2, %v2827_v33 }
 0x105   :  { %v2207_v45 = vpack.c.bf16 %v1071_v36, %v1055_v35  ;;  %v1074_v46 = vmul.f32 %v560_v43, %v560_v43  ;;  %2134 = vmatmul.mubr.msk.f32.vlgmr.msra.gmra.mrb[64].mxu1 %vm1180_vm2, %v2827_v33  ;;  %1390 = vmatprep.mubr.f32.mxu0 %v2400_v3 }
 0x106   :  { %v2223_v47 = vpack.c.bf16 %v1073_v41, %v1057_v39  ;;  %v2205_v48 = vpack.c.bf16 %v1072_v42, %v1056_v40  ;;  %v451_v49 = vpop.f32.mrb[20].mxu0  ;;  %1461 = vmatprep.mubr.f32.mxu1 %v2400_v3 }
 0x107   :  { %v2221_v50 = vpack.c.bf16 %v1074_v46, %v1058_v44  ;;  %v564_v51 = vpop.f32.mrb[20].mxu1  ;;  %v453_v52 = vpop.f32.mrb[21].mxu0  ;;  %v1087_v55 = vmul.f32 %v451_v49, %v451_v49 }
 0x108   :  { %v566_v53 = vpop.f32.mrb[21].mxu1  ;;  %2206 = vmatprep.subr.bf16.mxu0 %v2205_v48  ;;  %v1089_v59 = vmul.f32 %v564_v51, %v564_v51  ;;  %v1088_v60 = vmul.f32 %v453_v52, %v453_v52 }
 0x109   :  { %2222 = vmatprep.subr.bf16.mxu1 %v2221_v50  ;;  %2208 = vmatpush1.bf16.msra.mxu0 %v2207_v45  ;;  %v1090_v0 = vmul.f32 %v566_v53, %v566_v53 }
 0x10a   :  { %2224 = vmatpush1.bf16.msra.mxu1 %v2223_v47  ;;  %v457_v54 = vpop.f32.mrb[22].mxu0 }
 0x10b   :  { %v1103_v56 = vmul.f32 %v457_v54, %v457_v54  ;;  %v570_v57 = vpop.f32.mrb[22].mxu1  ;;  %v459_v58 = vpop.f32.mrb[23].mxu0 }
 0x10c   :  { %v1105_v61 = vmul.f32 %v570_v57, %v570_v57  ;;  %v1104_v62 = vmul.f32 %v459_v58, %v459_v58  ;;  %v572_v63 = vpop.f32.mrb[23].mxu1 }
 0x10d   :  { %v2211_v1 = vpack.c.bf16 %v1103_v56, %v1087_v55  ;;  %v1106_v2 = vmul.f32 %v572_v63, %v572_v63 }
 0x10e   :  { %v2227_v4 = vpack.c.bf16 %v1105_v61, %v1089_v59  ;;  %v2209_v5 = vpack.c.bf16 %v1104_v62, %v1088_v60  ;;  %v463_v6 = vpop.f32.mrb[24].mxu0 }
 0x10f   :  { %v2225_v7 = vpack.c.bf16 %v1106_v2, %v1090_v0  ;;  %v576_v8 = vpop.f32.mrb[24].mxu1  ;;  %v465_v9 = vpop.f32.mrb[25].mxu0  ;;  %v1119_v12 = vmul.f32 %v463_v6, %v463_v6 }
 0x110   :  { %v578_v10 = vpop.f32.mrb[25].mxu1  ;;  %2210 = vmatprep.subr.bf16.mxu0 %v2209_v5  ;;  %v1121_v16 = vmul.f32 %v576_v8, %v576_v8  ;;  %v1120_v17 = vmul.f32 %v465_v9, %v465_v9 }
 0x111   :  { %2226 = vmatprep.subr.bf16.mxu1 %v2225_v7  ;;  %2212 = vmatpush1.bf16.msra.mxu0 %v2211_v1  ;;  %v1122_v21 = vmul.f32 %v578_v10, %v578_v10 }
 0x112   :  { %2228 = vmatpush1.bf16.msra.mxu1 %v2227_v4  ;;  %v469_v11 = vpop.f32.mrb[26].mxu0 }
 0x113   :  { %v1135_v13 = vmul.f32 %v469_v11, %v469_v11  ;;  %v582_v14 = vpop.f32.mrb[26].mxu1  ;;  %v471_v15 = vpop.f32.mrb[27].mxu0 }
 0x114   :  { %v1137_v18 = vmul.f32 %v582_v14, %v582_v14  ;;  %v1136_v19 = vmul.f32 %v471_v15, %v471_v15  ;;  %v584_v20 = vpop.f32.mrb[27].mxu1 }
 0x115   :  { %v2215_v22 = vpack.c.bf16 %v1135_v13, %v1119_v12  ;;  %v1138_v23 = vmul.f32 %v584_v20, %v584_v20 }
 0x116   :  { %v2231_v24 = vpack.c.bf16 %v1137_v18, %v1121_v16  ;;  %v2213_v25 = vpack.c.bf16 %v1136_v19, %v1120_v17  ;;  %v475_v26 = vpop.f32.mrb[28].mxu0 }
 0x117   :  { %v2229_v27 = vpack.c.bf16 %v1138_v23, %v1122_v21  ;;  %v588_v28 = vpop.f32.mrb[28].mxu1  ;;  %v477_v29 = vpop.f32.mrb[29].mxu0  ;;  %v1151_v32 = vmul.f32 %v475_v26, %v475_v26 }
 0x118   :  { %v590_v30 = vpop.f32.mrb[29].mxu1  ;;  %2214 = vmatprep.subr.bf16.mxu0 %v2213_v25  ;;  %v1153_v37 = vmul.f32 %v588_v28, %v588_v28  ;;  %v1152_v38 = vmul.f32 %v477_v29, %v477_v29 }
 0x119   :  { %2230 = vmatprep.subr.bf16.mxu1 %v2229_v27  ;;  %2216 = vmatpush1.bf16.msra.mxu0 %v2215_v22  ;;  %v1154_v42 = vmul.f32 %v590_v30, %v590_v30 }
 0x11a   :  { %2232 = vmatpush1.bf16.msra.mxu1 %v2231_v24  ;;  %v481_v31 = vpop.f32.mrb[30].mxu0 }
 0x11b   :  { %v1167_v34 = vmul.f32 %v481_v31, %v481_v31  ;;  %v594_v35 = vpop.f32.mrb[30].mxu1  ;;  %v483_v36 = vpop.f32.mrb[31].mxu0 }
 0x11c   :  { %v1169_v39 = vmul.f32 %v594_v35, %v594_v35  ;;  %v1168_v40 = vmul.f32 %v483_v36, %v483_v36  ;;  %v596_v41 = vpop.f32.mrb[31].mxu1 }
 0x11d   :  { %v2219_v43 = vpack.c.bf16 %v1167_v34, %v1151_v32  ;;  %v1170_v44 = vmul.f32 %v596_v41, %v596_v41 }
 0x11e   :  { %v2235_v45 = vpack.c.bf16 %v1169_v39, %v1153_v37  ;;  %v2217_v46 = vpack.c.bf16 %v1168_v40, %v1152_v38  ;;  %v665_v47 = vpop.f32.mrb[32].mxu0 }
 0x11f   :  { %v2233_v48 = vpack.c.bf16 %v1170_v44, %v1154_v42  ;;  %v778_v49 = vpop.f32.mrb[32].mxu1  ;;  %v667_v50 = vpop.f32.mrb[33].mxu0  ;;  %v1059_v53 = vmul.f32 %v665_v47, %v665_v47 }
 0x120   :  { %v780_v51 = vpop.f32.mrb[33].mxu1  ;;  %2218 = vmatprep.subr.bf16.mxu0 %v2217_v46  ;;  %v1061_v57 = vmul.f32 %v778_v49, %v778_v49  ;;  %v1060_v58 = vmul.f32 %v667_v50, %v667_v50 }
 0x121   :  { %2234 = vmatprep.subr.bf16.mxu1 %v2233_v48  ;;  %2220 = vmatpush1.bf16.msra.mxu0 %v2219_v43  ;;  %v1062_v62 = vmul.f32 %v780_v51, %v780_v51 }
 0x122   :  { %2236 = vmatpush1.bf16.msra.mxu1 %v2235_v45  ;;  %v671_v52 = vpop.f32.mrb[34].mxu0 }
 0x123   :  { %v1075_v54 = vmul.f32 %v671_v52, %v671_v52  ;;  %v784_v55 = vpop.f32.mrb[34].mxu1  ;;  %v673_v56 = vpop.f32.mrb[35].mxu0 }
 0x124   :  { %v1077_v59 = vmul.f32 %v784_v55, %v784_v55  ;;  %v1076_v60 = vmul.f32 %v673_v56, %v673_v56  ;;  %v786_v61 = vpop.f32.mrb[35].mxu1  ;;  %2135 = vmatmul.mubr.msk.f32.vlgmr.msra.gmra.mrb[66].mxu0 %vm1180_vm2, %v2827_v33 }
 0x125   :  { %v2239_v63 = vpack.c.bf16 %v1075_v54, %v1059_v53  ;;  %v1078_v0 = vmul.f32 %v786_v61, %v786_v61  ;;  %2136 = vmatmul.mubr.msk.f32.vlgmr.msra.gmra.mrb[66].mxu1 %vm1180_vm2, %v2827_v33  ;;  %1532 = vmatprep.mubr.f32.mxu0 %v2400_v3 }
 0x126   :  { %v2255_v1 = vpack.c.bf16 %v1077_v59, %v1061_v57  ;;  %v2237_v2 = vpack.c.bf16 %v1076_v60, %v1060_v58  ;;  %v677_v4 = vpop.f32.mrb[36].mxu0  ;;  %1603 = vmatprep.mubr.f32.mxu1 %v2400_v3 }
 0x127   :  { %v2253_v5 = vpack.c.bf16 %v1078_v0, %v1062_v62  ;;  %v790_v6 = vpop.f32.mrb[36].mxu1  ;;  %v679_v7 = vpop.f32.mrb[37].mxu0  ;;  %v1091_v10 = vmul.f32 %v677_v4, %v677_v4 }
 0x128   :  { %v792_v8 = vpop.f32.mrb[37].mxu1  ;;  %2238 = vmatprep.subr.bf16.mxu0 %v2237_v2  ;;  %v1093_v14 = vmul.f32 %v790_v6, %v790_v6  ;;  %v1092_v15 = vmul.f32 %v679_v7, %v679_v7 }
 0x129   :  { %2254 = vmatprep.subr.bf16.mxu1 %v2253_v5  ;;  %2240 = vmatpush1.bf16.msra.mxu0 %v2239_v63  ;;  %v1094_v19 = vmul.f32 %v792_v8, %v792_v8 }
 0x12a   :  { %2256 = vmatpush1.bf16.msra.mxu1 %v2255_v1  ;;  %v683_v9 = vpop.f32.mrb[38].mxu0 }
 0x12b   :  { %v1107_v11 = vmul.f32 %v683_v9, %v683_v9  ;;  %v796_v12 = vpop.f32.mrb[38].mxu1  ;;  %v685_v13 = vpop.f32.mrb[39].mxu0 }
 0x12c   :  { %v1109_v16 = vmul.f32 %v796_v12, %v796_v12  ;;  %v1108_v17 = vmul.f32 %v685_v13, %v685_v13  ;;  %v798_v18 = vpop.f32.mrb[39].mxu1 }
 0x12d   :  { %v2243_v20 = vpack.c.bf16 %v1107_v11, %v1091_v10  ;;  %v1110_v21 = vmul.f32 %v798_v18, %v798_v18 }
 0x12e   :  { %v2259_v22 = vpack.c.bf16 %v1109_v16, %v1093_v14  ;;  %v2241_v23 = vpack.c.bf16 %v1108_v17, %v1092_v15  ;;  %v689_v24 = vpop.f32.mrb[40].mxu0 }
 0x12f   :  { %v2257_v25 = vpack.c.bf16 %v1110_v21, %v1094_v19  ;;  %v802_v26 = vpop.f32.mrb[40].mxu1  ;;  %v691_v27 = vpop.f32.mrb[41].mxu0  ;;  %v1123_v30 = vmul.f32 %v689_v24, %v689_v24 }
 0x130   :  { %v804_v28 = vpop.f32.mrb[41].mxu1  ;;  %2242 = vmatprep.subr.bf16.mxu0 %v2241_v23  ;;  %v1125_v35 = vmul.f32 %v802_v26, %v802_v26  ;;  %v1124_v36 = vmul.f32 %v691_v27, %v691_v27 }
 0x131   :  { %2258 = vmatprep.subr.bf16.mxu1 %v2257_v25  ;;  %2244 = vmatpush1.bf16.msra.mxu0 %v2243_v20  ;;  %v1126_v40 = vmul.f32 %v804_v28, %v804_v28 }
 0x132   :  { %2260 = vmatpush1.bf16.msra.mxu1 %v2259_v22  ;;  %v695_v29 = vpop.f32.mrb[42].mxu0 }
 0x133   :  { %v1139_v31 = vmul.f32 %v695_v29, %v695_v29  ;;  %v808_v32 = vpop.f32.mrb[42].mxu1  ;;  %v697_v34 = vpop.f32.mrb[43].mxu0 }
 0x134   :  { %v1141_v37 = vmul.f32 %v808_v32, %v808_v32  ;;  %v1140_v38 = vmul.f32 %v697_v34, %v697_v34  ;;  %v810_v39 = vpop.f32.mrb[43].mxu1 }
 0x135   :  { %v2247_v41 = vpack.c.bf16 %v1139_v31, %v1123_v30  ;;  %v1142_v42 = vmul.f32 %v810_v39, %v810_v39 }
 0x136   :  { %v2263_v43 = vpack.c.bf16 %v1141_v37, %v1125_v35  ;;  %v2245_v44 = vpack.c.bf16 %v1140_v38, %v1124_v36  ;;  %v701_v45 = vpop.f32.mrb[44].mxu0 }
 0x137   :  { %v2261_v46 = vpack.c.bf16 %v1142_v42, %v1126_v40  ;;  %v814_v47 = vpop.f32.mrb[44].mxu1  ;;  %v703_v48 = vpop.f32.mrb[45].mxu0  ;;  %v1155_v51 = vmul.f32 %v701_v45, %v701_v45 }
 0x138   :  { %v816_v49 = vpop.f32.mrb[45].mxu1  ;;  %2246 = vmatprep.subr.bf16.mxu0 %v2245_v44  ;;  %v1157_v55 = vmul.f32 %v814_v47, %v814_v47  ;;  %v1156_v56 = vmul.f32 %v703_v48, %v703_v48 }
 0x139   :  { %2262 = vmatprep.subr.bf16.mxu1 %v2261_v46  ;;  %2248 = vmatpush1.bf16.msra.mxu0 %v2247_v41  ;;  %v1158_v60 = vmul.f32 %v816_v49, %v816_v49 }
 0x13a   :  { %2264 = vmatpush1.bf16.msra.mxu1 %v2263_v43  ;;  %v707_v50 = vpop.f32.mrb[46].mxu0 }
 0x13b   :  { %v1171_v52 = vmul.f32 %v707_v50, %v707_v50  ;;  %v820_v53 = vpop.f32.mrb[46].mxu1  ;;  %v709_v54 = vpop.f32.mrb[47].mxu0 }
 0x13c   :  { %v1173_v57 = vmul.f32 %v820_v53, %v820_v53  ;;  %v1172_v58 = vmul.f32 %v709_v54, %v709_v54  ;;  %v822_v59 = vpop.f32.mrb[47].mxu1 }
 0x13d   :  { %v2251_v61 = vpack.c.bf16 %v1171_v52, %v1155_v51  ;;  %v1174_v62 = vmul.f32 %v822_v59, %v822_v59 }
 0x13e   :  { %v2267_v63 = vpack.c.bf16 %v1173_v57, %v1157_v55  ;;  %v2249_v0 = vpack.c.bf16 %v1172_v58, %v1156_v56  ;;  %v891_v1 = vpop.f32.mrb[48].mxu0 }
 0x13f   :  { %v2265_v2 = vpack.c.bf16 %v1174_v62, %v1158_v60  ;;  %v1004_v4 = vpop.f32.mrb[48].mxu1  ;;  %v893_v5 = vpop.f32.mrb[49].mxu0  ;;  %v1063_v8 = vmul.f32 %v891_v1, %v891_v1 }
 0x140   :  { %v1006_v6 = vpop.f32.mrb[49].mxu1  ;;  %2250 = vmatprep.subr.bf16.mxu0 %v2249_v0  ;;  %v1065_v12 = vmul.f32 %v1004_v4, %v1004_v4  ;;  %v1064_v13 = vmul.f32 %v893_v5, %v893_v5 }
 0x141   :  { %2266 = vmatprep.subr.bf16.mxu1 %v2265_v2  ;;  %2252 = vmatpush1.bf16.msra.mxu0 %v2251_v61  ;;  %v1066_v17 = vmul.f32 %v1006_v6, %v1006_v6 }
 0x142   :  { %2268 = vmatpush1.bf16.msra.mxu1 %v2267_v63  ;;  %v897_v7 = vpop.f32.mrb[50].mxu0 }
 0x143   :  { %v1079_v9 = vmul.f32 %v897_v7, %v897_v7  ;;  %v1010_v10 = vpop.f32.mrb[50].mxu1  ;;  %v899_v11 = vpop.f32.mrb[51].mxu0 }
 0x144   :  { %v1081_v14 = vmul.f32 %v1010_v10, %v1010_v10  ;;  %v1080_v15 = vmul.f32 %v899_v11, %v899_v11  ;;  %v1012_v16 = vpop.f32.mrb[51].mxu1  ;;  %2137 = vmatmul.mubr.msk.f32.vlgmr.msra.gmra.mrb[68].mxu0 %vm1180_vm2, %v2827_v33 }
 0x145   :  { %v2271_v18 = vpack.c.bf16 %v1079_v9, %v1063_v8  ;;  %v1082_v19 = vmul.f32 %v1012_v16, %v1012_v16  ;;  %2138 = vmatmul.mubr.msk.f32.vlgmr.msra.gmra.mrb[68].mxu1 %vm1180_vm2, %v2827_v33  ;;  %1674 = vmatprep.mubr.f32.mxu0 %v2400_v3 }
 0x146   :  { %v2287_v20 = vpack.c.bf16 %v1081_v14, %v1065_v12  ;;  %v2269_v21 = vpack.c.bf16 %v1080_v15, %v1064_v13  ;;  %v903_v22 = vpop.f32.mrb[52].mxu0  ;;  %1745 = vmatprep.mubr.f32.mxu1 %v2400_v3 }
 0x147   :  { %v2285_v23 = vpack.c.bf16 %v1082_v19, %v1066_v17  ;;  %v1016_v24 = vpop.f32.mrb[52].mxu1  ;;  %v905_v25 = vpop.f32.mrb[53].mxu0  ;;  %v1095_v28 = vmul.f32 %v903_v22, %v903_v22 }
 0x148   :  { %v1018_v26 = vpop.f32.mrb[53].mxu1  ;;  %2270 = vmatprep.subr.bf16.mxu0 %v2269_v21  ;;  %v1097_v32 = vmul.f32 %v1016_v24, %v1016_v24  ;;  %v1096_v34 = vmul.f32 %v905_v25, %v905_v25  ;;  %v2851_v21 = vpop.permute.xlu0 %1771 }
 0x149   :  { %2286 = vmatprep.subr.bf16.mxu1 %v2285_v23  ;;  %2272 = vmatpush1.bf16.msra.mxu0 %v2271_v18  ;;  %v1098_v38 = vmul.f32 %v1018_v26, %v1018_v26 }
 0x14a   :  { %2288 = vmatpush1.bf16.msra.mxu1 %v2287_v20  ;;  %v909_v27 = vpop.f32.mrb[54].mxu0 }
 0x14b   :  { %v1111_v29 = vmul.f32 %v909_v27, %v909_v27  ;;  %v1022_v30 = vpop.f32.mrb[54].mxu1  ;;  %v911_v31 = vpop.f32.mrb[55].mxu0 }
 0x14c   :  { %v1113_v35 = vmul.f32 %v1022_v30, %v1022_v30  ;;  %v1112_v36 = vmul.f32 %v911_v31, %v911_v31  ;;  %v1024_v37 = vpop.f32.mrb[55].mxu1 }
 0x14d   :  { %v2275_v3 = vpack.c.bf16 %v1111_v29, %v1095_v28  ;;  %v1114_v39 = vmul.f32 %v1024_v37, %v1024_v37 }
 0x14e   :  { %v2291_v40 = vpack.c.bf16 %v1113_v35, %v1097_v32  ;;  %v2273_v41 = vpack.c.bf16 %v1112_v36, %v1096_v34  ;;  %v915_v42 = vpop.f32.mrb[56].mxu0 }
 0x14f   :  { %v2289_v43 = vpack.c.bf16 %v1114_v39, %v1098_v38  ;;  %v1028_v44 = vpop.f32.mrb[56].mxu1  ;;  %v917_v45 = vpop.f32.mrb[57].mxu0  ;;  %v1127_v48 = vmul.f32 %v915_v42, %v915_v42 }
 0x150   :  { %v1030_v46 = vpop.f32.mrb[57].mxu1  ;;  %2274 = vmatprep.subr.bf16.mxu0 %v2273_v41  ;;  %v1129_v52 = vmul.f32 %v1028_v44, %v1028_v44  ;;  %v1128_v53 = vmul.f32 %v917_v45, %v917_v45 }
 0x151   :  { %2290 = vmatprep.subr.bf16.mxu1 %v2289_v43  ;;  %2276 = vmatpush1.bf16.msra.mxu0 %v2275_v3  ;;  %v1130_v57 = vmul.f32 %v1030_v46, %v1030_v46 }
 0x152   :  { %2292 = vmatpush1.bf16.msra.mxu1 %v2291_v40  ;;  %v921_v47 = vpop.f32.mrb[58].mxu0 }
 0x153   :  { %v1143_v49 = vmul.f32 %v921_v47, %v921_v47  ;;  %v1034_v50 = vpop.f32.mrb[58].mxu1  ;;  %v923_v51 = vpop.f32.mrb[59].mxu0 }
 0x154   :  { %v1145_v54 = vmul.f32 %v1034_v50, %v1034_v50  ;;  %v1144_v55 = vmul.f32 %v923_v51, %v923_v51  ;;  %v1036_v56 = vpop.f32.mrb[59].mxu1 }
 0x155   :  { %v2279_v58 = vpack.c.bf16 %v1143_v49, %v1127_v48  ;;  %v1146_v59 = vmul.f32 %v1036_v56, %v1036_v56 }
 0x156   :  { %v2295_v60 = vpack.c.bf16 %v1145_v54, %v1129_v52  ;;  %v2277_v61 = vpack.c.bf16 %v1144_v55, %v1128_v53  ;;  %v927_v62 = vpop.f32.mrb[60].mxu0 }
 0x157   :  { %v2293_v63 = vpack.c.bf16 %v1146_v59, %v1130_v57  ;;  %v1040_v0 = vpop.f32.mrb[60].mxu1  ;;  %v929_v1 = vpop.f32.mrb[61].mxu0  ;;  %v1159_v5 = vmul.f32 %v927_v62, %v927_v62 }
 0x158   :  { %v1042_v2 = vpop.f32.mrb[61].mxu1  ;;  %2278 = vmatprep.subr.bf16.mxu0 %v2277_v61  ;;  %v1161_v9 = vmul.f32 %v1040_v0, %v1040_v0  ;;  %v1160_v10 = vmul.f32 %v929_v1, %v929_v1 }
 0x159   :  { %2294 = vmatprep.subr.bf16.mxu1 %v2293_v63  ;;  %2280 = vmatpush1.bf16.msra.mxu0 %v2279_v58  ;;  %v1162_v14 = vmul.f32 %v1042_v2, %v1042_v2 }
 0x15a   :  { %2296 = vmatpush1.bf16.msra.mxu1 %v2295_v60  ;;  %v933_v4 = vpop.f32.mrb[62].mxu0 }
 0x15b   :  { %v1175_v6 = vmul.f32 %v933_v4, %v933_v4  ;;  %v1046_v7 = vpop.f32.mrb[62].mxu1  ;;  %v935_v8 = vpop.f32.mrb[63].mxu0 }
 0x15c   :  { %v1177_v11 = vmul.f32 %v1046_v7, %v1046_v7  ;;  %v1176_v12 = vmul.f32 %v935_v8, %v935_v8  ;;  %v1048_v13 = vpop.f32.mrb[63].mxu1 }
 0x15d   :  { %v2283_v15 = vpack.c.bf16 %v1175_v6, %v1159_v5  ;;  %v1178_v16 = vmul.f32 %v1048_v13, %v1048_v13 }
 0x15e   :  { %v2299_v17 = vpack.c.bf16 %v1177_v11, %v1161_v9  ;;  %v2281_v18 = vpack.c.bf16 %v1176_v12, %v1160_v10 }
 0x15f   :  { %v2297_v19 = vpack.c.bf16 %v1178_v16, %v1162_v14 }
 0x160   :  { %2282 = vmatprep.subr.bf16.mxu0 %v2281_v18 }
 0x161   :  { %2298 = vmatprep.subr.bf16.mxu1 %v2297_v19  ;;  %2284 = vmatpush1.bf16.msra.mxu0 %v2283_v15 }
 0x162   :  { %2300 = vmatpush1.bf16.msra.mxu1 %v2299_v17 }
 0x164   :  { %2139 = vmatmul.mubr.msk.f32.vlgmr.msra.gmra.mrb[70].mxu0 %vm1180_vm2, %v2827_v33 }
 0x165   :  { %2140 = vmatmul.mubr.msk.f32.vlgmr.msra.gmra.mrb[70].mxu1 %vm1180_vm2, %v2827_v33 }
 0x1d7   :  { %v1250_v20 = vpop.f32.mrb[64].mxu0 }
 0x1d8   :  { %v1753_v22 = vmul.f32 0.5, %v1250_v20  ;;  %v1321_v23 = vpop.f32.mrb[64].mxu1  ;;  %v1252_v24 = vpop.f32.mrb[65].mxu0 }
 0x1d9   :  { %v1755_v25 = vmul.f32 0.5, %v1321_v23  ;;  %v1754_v26 = vmul.f32 0.5, %v1252_v24  ;;  %v1323_v27 = vpop.f32.mrb[65].mxu1  ;;  %v2014_v23 = vlaneseq }
 0x1da   :  { %v1756_v28 = vmul.f32 0.5, %v1323_v27  ;;  %v1774_v29 = vsub.f32 %v2851_v21, %v1753_v22 }
 0x1db   :  { %v1775_v30 = vsub.f32 %v2851_v21, %v1754_v26  ;;  %v1776_v31 = vsub.f32 %v2851_v21, %v1755_v25 }
 0x1dc   :  { %v1777_v32 = vsub.f32 %v2851_v21, %v1756_v28  ;;  %v1790_v34 = vmul.f32 1.442695, %v1774_v29  ;;  %v2877_v28 = vshrl.u32 %v2014_v23, 7 }
 0x1dd   :  { %v1792_v33 = vmul.f32 1.442695, %v1775_v30  ;;  %v1794_v35 = vmul.f32 1.442695, %v1776_v31 }
 0x1de   :  { %2304 = vpow2.f32 %v1790_v34  ;;  %v1796_v36 = vmul.f32 1.442695, %v1777_v32  ;;  %vm2016_vm3 = vcmp.eq.s32.totalorder %v2877_v28, 4 }
 0x1df   :  { %2306 = vpow2.f32 %v1792_v33 }
 0x1e0   :  { %2308 = vpow2.f32 %v1794_v35 }
 0x1e1   :  { %2310 = vpow2.f32 %v1796_v36 }
 0x1e8   :  { %v2857_v37 = vpop.eup %2304 }
 0x1e9   :  { %v2859_v38 = vpop.eup %2306  ;;  %v1822_v3 = vrot.slane %v2857_v37, 4 }
 0x1ea   :  { %v2862_v39 = vpop.eup %2308  ;;  %v1828_v40 = vrot.slane %v2859_v38, 4 }
 0x1eb   :  { %v2865_v41 = vpop.eup %2310  ;;  %v1823_v42 = vadd.f32 %v2857_v37, %v1822_v3  ;;  %v1834_v43 = vrot.slane %v2862_v39, 4 }
 0x1ec   :  { %v1829_v44 = vadd.f32 %v2859_v38, %v1828_v40  ;;  %v1840_v45 = vrot.slane %v2865_v41, 4 }
 0x1ed   :  { %v1824_v46 = vrot.slane %v1823_v42, 2  ;;  %v1835_v47 = vadd.f32 %v2862_v39, %v1834_v43 }
 0x1ee   :  { %v1830_v48 = vrot.slane %v1829_v44, 2  ;;  %v1841_v49 = vadd.f32 %v2865_v41, %v1840_v45 }
 0x1ef   :  { %v1825_v50 = vadd.f32 %v1824_v46, %v1823_v42  ;;  %v1836_v51 = vrot.slane %v1835_v47, 2 }
 0x1f0   :  { %v1831_v52 = vadd.f32 %v1830_v48, %v1829_v44  ;;  %v1842_v53 = vrot.slane %v1841_v49, 2 }
 0x1f1   :  { %v1826_v54 = vrot.slane %v1825_v50, 1  ;;  %v1837_v55 = vadd.f32 %v1836_v51, %v1835_v47 }
 0x1f2   :  { %v1832_v56 = vrot.slane %v1831_v52, 1  ;;  %v1843_v57 = vadd.f32 %v1842_v53, %v1841_v49 }
 0x1f3   :  { %v1827_v58 = vadd.f32 %v1826_v54, %v1825_v50  ;;  %v1838_v59 = vrot.slane %v1837_v55, 1 }
 0x1f4   :  { %v1833_v60 = vadd.f32 %v1832_v56, %v1831_v52  ;;  %v1844_v61 = vrot.slane %v1843_v57, 1 }
 0x1f5   :  { %v1839_v62 = vadd.f32 %v1838_v59, %v1837_v55  ;;  %v1918_v63 = vadd.f32 1e-06, %v1827_v58  ;;  %v1966_v2 = vmax.f32 %v1827_v58, 1e-10 }
 0x1f6   :  { %v1845_v0 = vadd.f32 %v1844_v61, %v1843_v57  ;;  %v1919_v1 = vadd.f32 1e-06, %v1833_v60  ;;  %v1967_v5 = vmax.f32 %v1833_v60, 1e-10 }
 0x1f7   :  { %v1920_v4 = vadd.f32 1e-06, %v1839_v62  ;;  %2312 = vrcp.f32 %v1918_v63  ;;  %v1392_v6 = vpop.f32.mrb[66].mxu0  ;;  %v1968_v8 = vmax.f32 %v1839_v62, 1e-10 }
 0x1f8   :  { %v1921_v7 = vadd.f32 1e-06, %v1845_v0  ;;  %2314 = vrcp.f32 %v1919_v1  ;;  %v1757_v9 = vmul.f32 0.5, %v1392_v6  ;;  %v1463_v10 = vpop.f32.mrb[66].mxu1  ;;  %v1969_v11 = vmax.f32 %v1845_v0, 1e-10 }
 0x1f9   :  { %2316 = vrcp.f32 %v1920_v4  ;;  %v1759_v12 = vmul.f32 0.5, %v1463_v10  ;;  %v1394_v13 = vpop.f32.mrb[67].mxu0  ;;  %v1465_v14 = vpop.f32.mrb[67].mxu1 }
 0x1fa   :  { %2318 = vrcp.f32 %v1921_v7  ;;  %v1778_v15 = vsub.f32 %v2851_v21, %v1757_v9  ;;  %v1758_v16 = vmul.f32 0.5, %v1394_v13  ;;  %v1760_v17 = vmul.f32 0.5, %v1465_v14 }
 0x1fb   :  { %2320 = vlog2.f32 %v1966_v2  ;;  %v1780_v18 = vsub.f32 %v2851_v21, %v1759_v12 }
 0x1fc   :  { %2322 = vlog2.f32 %v1967_v5  ;;  %v1798_v19 = vmul.f32 1.442695, %v1778_v15  ;;  %v1779_v20 = vsub.f32 %v2851_v21, %v1758_v16  ;;  %v1781_v22 = vsub.f32 %v2851_v21, %v1760_v17 }
 0x1fd   :  { %2324 = vlog2.f32 %v1968_v8  ;;  %v1802_v24 = vmul.f32 1.442695, %v1780_v18 }
 0x1fe   :  { %2326 = vlog2.f32 %v1969_v11  ;;  %v1800_v25 = vmul.f32 1.442695, %v1779_v20  ;;  %v1804_v26 = vmul.f32 1.442695, %v1781_v22 }
 0x1ff   :  { %2328 = vpow2.f32 %v1798_v19 }
 0x200   :  { %2330 = vpow2.f32 %v1802_v24 }
 0x201   :  { %v2313_v27 = vpop.eup %2312  ;;  %2332 = vpow2.f32 %v1800_v25 }
 0x202   :  { %v2315_v29 = vpop.eup %2314  ;;  %2334 = vpow2.f32 %v1804_v26  ;;  %v1950_v32 = vmul.f32 %v2313_v27, %v2857_v37 }
 0x203   :  { %v2317_v30 = vpop.eup %2316  ;;  %v1951_v33 = vmul.f32 %v2315_v29, %v2859_v38 }
 0x204   :  { %v2319_v31 = vpop.eup %2318  ;;  %v1952_v36 = vmul.f32 %v2317_v30, %v2862_v39 }
 0x205   :  { %v2321_v34 = vpop.eup %2320  ;;  %v1953_v42 = vmul.f32 %v2319_v31, %v2865_v41 }
 0x206   :  { %v2323_v35 = vpop.eup %2322  ;;  %v1983_v3 = vmul.f32 0.6931472, %v2321_v34 }
 0x207   :  { %v2325_v40 = vpop.eup %2324  ;;  %v1985_v43 = vmul.f32 0.6931472, %v2323_v35 }
 0x208   :  { %v2327_v44 = vpop.eup %2326  ;;  %v1987_v45 = vmul.f32 0.6931472, %v2325_v40  ;;  %v2017_v46 = vsel %vm2016_vm3, %v1983_v3, %v1950_v32 }
 0x209   :  { %v2886_v47 = vpop.eup %2328  ;;  %v1989_v37 = vmul.f32 0.6931472, %v2327_v44  ;;  %v2018_v48 = vsel %vm2016_vm3, %v1985_v43, %v1951_v33  ;;  %2033 = vst [vmem:[%s3016_s4] sm:$0xff] %v2017_v46 }
 0x20a   :  { %v2893_v38 = vpop.eup %2330  ;;  %v2019_v39 = vsel %vm2016_vm3, %v1987_v45, %v1952_v36  ;;  %2034 = vst [vmem:[%s3016_s4 + $0x8] sm:$0xff] %v2018_v48  ;;  %v1846_v41 = vrot.slane %v2886_v47, 4 }
 0x20b   :  { %v2901_v49 = vpop.eup %2332  ;;  %v2020_v50 = vsel %vm2016_vm3, %v1989_v37, %v1953_v42  ;;  %2035 = vst [vmem:[%s3016_s4 + $0x10] sm:$0xff] %v2019_v39  ;;  %v1858_v51 = vrot.slane %v2893_v38, 4 }
 0x20c   :  { %v2909_v52 = vpop.eup %2334  ;;  %2036 = vst [vmem:[%s3016_s4 + $0x18] sm:$0xff] %v2020_v50  ;;  %v1847_v53 = vadd.f32 %v2886_v47, %v1846_v41  ;;  %v1852_v54 = vrot.slane %v2901_v49, 4 }
 0x20d   :  { %v1859_v55 = vadd.f32 %v2893_v38, %v1858_v51  ;;  %v1864_v56 = vrot.slane %v2909_v52, 4 }
 0x20e   :  { %v1848_v57 = vrot.slane %v1847_v53, 2  ;;  %v1853_v58 = vadd.f32 %v2901_v49, %v1852_v54 }
 0x20f   :  { %v1860_v59 = vrot.slane %v1859_v55, 2  ;;  %v1865_v60 = vadd.f32 %v2909_v52, %v1864_v56 }
 0x210   :  { %v1849_v61 = vadd.f32 %v1848_v57, %v1847_v53  ;;  %v1854_v62 = vrot.slane %v1853_v58, 2 }
 0x211   :  { %v1861_v63 = vadd.f32 %v1860_v59, %v1859_v55  ;;  %v1866_v0 = vrot.slane %v1865_v60, 2 }
 0x212   :  { %v1850_v1 = vrot.slane %v1849_v61, 1  ;;  %v1855_v2 = vadd.f32 %v1854_v62, %v1853_v58 }
 0x213   :  { %v1862_v4 = vrot.slane %v1861_v63, 1  ;;  %v1867_v5 = vadd.f32 %v1866_v0, %v1865_v60 }
 0x214   :  { %v1851_v6 = vadd.f32 %v1850_v1, %v1849_v61  ;;  %v1856_v7 = vrot.slane %v1855_v2, 1 }
 0x215   :  { %v1863_v8 = vadd.f32 %v1862_v4, %v1861_v63  ;;  %v1868_v9 = vrot.slane %v1867_v5, 1 }
 0x216   :  { %v1922_v10 = vadd.f32 1e-06, %v1851_v6  ;;  %v1970_v11 = vmax.f32 %v1851_v6, 1e-10  ;;  %v1857_v12 = vadd.f32 %v1856_v7, %v1855_v2 }
 0x217   :  { %v1924_v13 = vadd.f32 1e-06, %v1863_v8  ;;  %v1972_v14 = vmax.f32 %v1863_v8, 1e-10  ;;  %v1869_v15 = vadd.f32 %v1868_v9, %v1867_v5  ;;  %v1534_v16 = vpop.f32.mrb[68].mxu0 }
 0x218   :  { %2336 = vrcp.f32 %v1922_v10  ;;  %v1923_v17 = vadd.f32 1e-06, %v1857_v12  ;;  %v1761_v18 = vmul.f32 0.5, %v1534_v16  ;;  %v1605_v19 = vpop.f32.mrb[68].mxu1  ;;  %v1971_v20 = vmax.f32 %v1857_v12, 1e-10 }
 0x219   :  { %2338 = vlog2.f32 %v1970_v11  ;;  %v1763_v22 = vmul.f32 0.5, %v1605_v19  ;;  %v1536_v23 = vpop.f32.mrb[69].mxu0  ;;  %v1925_v24 = vadd.f32 1e-06, %v1869_v15  ;;  %v1607_v27 = vpop.f32.mrb[69].mxu1 }
 0x21a   :  { %2340 = vrcp.f32 %v1924_v13  ;;  %v1782_v25 = vsub.f32 %v2851_v21, %v1761_v18  ;;  %v1762_v26 = vmul.f32 0.5, %v1536_v23  ;;  %v1973_v29 = vmax.f32 %v1869_v15, 1e-10 }
 0x21b   :  { %2342 = vlog2.f32 %v1972_v14  ;;  %v1784_v30 = vsub.f32 %v2851_v21, %v1763_v22  ;;  %v1764_v31 = vmul.f32 0.5, %v1607_v27 }
 0x21c   :  { %2344 = vrcp.f32 %v1923_v17  ;;  %v1806_v32 = vmul.f32 1.442695, %v1782_v25  ;;  %v1783_v34 = vsub.f32 %v2851_v21, %v1762_v26 }
 0x21d   :  { %2346 = vlog2.f32 %v1971_v20  ;;  %v1810_v33 = vmul.f32 1.442695, %v1784_v30  ;;  %v1785_v35 = vsub.f32 %v2851_v21, %v1764_v31 }
 0x21e   :  { %2348 = vrcp.f32 %v1925_v24  ;;  %v1808_v36 = vmul.f32 1.442695, %v1783_v34 }
 0x21f   :  { %2350 = vlog2.f32 %v1973_v29  ;;  %v1812_v3 = vmul.f32 1.442695, %v1785_v35 }
 0x220   :  { %2352 = vpow2.f32 %v1806_v32 }
 0x221   :  { %2354 = vpow2.f32 %v1810_v33 }
 0x222   :  { %v2337_v40 = vpop.eup %2336  ;;  %2356 = vpow2.f32 %v1808_v36 }
 0x223   :  { %v2339_v42 = vpop.eup %2338  ;;  %v1954_v43 = vmul.f32 %v2337_v40, %v2886_v47  ;;  %2358 = vpow2.f32 %v1812_v3 }
 0x224   :  { %v2341_v44 = vpop.eup %2340  ;;  %v1991_v45 = vmul.f32 0.6931472, %v2339_v42 }
 0x225   :  { %v2343_v46 = vpop.eup %2342  ;;  %v1956_v37 = vmul.f32 %v2341_v44, %v2893_v38 }
 0x226   :  { %v2345_v48 = vpop.eup %2344  ;;  %v2021_v39 = vsel %vm2016_vm3, %v1991_v45, %v1954_v43  ;;  %v1995_v41 = vmul.f32 0.6931472, %v2343_v46 }
 0x227   :  { %v2347_v50 = vpop.eup %2346  ;;  %2037 = vst [vmem:[%s3016_s4 + $0x20] sm:$0xff] %v2021_v39  ;;  %v1955_v51 = vmul.f32 %v2345_v48, %v2901_v49 }
 0x228   :  { %v2349_v53 = vpop.eup %2348  ;;  %v2023_v47 = vsel %vm2016_vm3, %v1995_v41, %v1956_v37  ;;  %v1993_v54 = vmul.f32 0.6931472, %v2347_v50 }
 0x229   :  { %v2351_v55 = vpop.eup %2350  ;;  %2039 = vst [vmem:[%s3016_s4 + $0x30] sm:$0xff] %v2023_v47  ;;  %v1957_v38 = vmul.f32 %v2349_v53, %v2909_v52 }
 0x22a   :  { %v2938_v56 = vpop.eup %2352  ;;  %v2022_v57 = vsel %vm2016_vm3, %v1993_v54, %v1955_v51  ;;  %v1997_v58 = vmul.f32 0.6931472, %v2351_v55 }
 0x22b   :  { %v2942_v59 = vpop.eup %2354  ;;  %2038 = vst [vmem:[%s3016_s4 + $0x28] sm:$0xff] %v2022_v57  ;;  %v1870_v49 = vrot.slane %v2938_v56, 4 }
 0x22c   :  { %v2948_v60 = vpop.eup %2356  ;;  %v2024_v61 = vsel %vm2016_vm3, %v1997_v58, %v1957_v38  ;;  %v1882_v52 = vrot.slane %v2942_v59, 4 }
 0x22d   :  { %v2953_v62 = vpop.eup %2358  ;;  %2040 = vst [vmem:[%s3016_s4 + $0x38] sm:$0xff] %v2024_v61  ;;  %v1871_v63 = vadd.f32 %v2938_v56, %v1870_v49  ;;  %v1876_v0 = vrot.slane %v2948_v60, 4 }
 0x22e   :  { %v1883_v1 = vadd.f32 %v2942_v59, %v1882_v52  ;;  %v1888_v2 = vrot.slane %v2953_v62, 4 }
 0x22f   :  { %v1872_v4 = vrot.slane %v1871_v63, 2  ;;  %v1877_v5 = vadd.f32 %v2948_v60, %v1876_v0 }
 0x230   :  { %v1884_v6 = vrot.slane %v1883_v1, 2  ;;  %v1889_v7 = vadd.f32 %v2953_v62, %v1888_v2 }
 0x231   :  { %v1873_v8 = vadd.f32 %v1872_v4, %v1871_v63  ;;  %v1878_v9 = vrot.slane %v1877_v5, 2 }
 0x232   :  { %v1885_v10 = vadd.f32 %v1884_v6, %v1883_v1  ;;  %v1890_v11 = vrot.slane %v1889_v7, 2 }
 0x233   :  { %v1874_v12 = vrot.slane %v1873_v8, 1  ;;  %v1879_v13 = vadd.f32 %v1878_v9, %v1877_v5 }
 0x234   :  { %v1886_v14 = vrot.slane %v1885_v10, 1  ;;  %v1891_v15 = vadd.f32 %v1890_v11, %v1889_v7 }
 0x235   :  { %v1875_v16 = vadd.f32 %v1874_v12, %v1873_v8  ;;  %v1880_v17 = vrot.slane %v1879_v13, 1 }
 0x236   :  { %v1887_v18 = vadd.f32 %v1886_v14, %v1885_v10  ;;  %v1892_v19 = vrot.slane %v1891_v15, 1 }
 0x237   :  { %v1926_v20 = vadd.f32 1e-06, %v1875_v16  ;;  %v1974_v22 = vmax.f32 %v1875_v16, 1e-10  ;;  %v1881_v23 = vadd.f32 %v1880_v17, %v1879_v13  ;;  %v1676_v24 = vpop.f32.mrb[70].mxu0 }
 0x238   :  { %v1928_v25 = vadd.f32 1e-06, %v1887_v18  ;;  %v1976_v26 = vmax.f32 %v1887_v18, 1e-10  ;;  %v1893_v27 = vadd.f32 %v1892_v19, %v1891_v15  ;;  %v1765_v29 = vmul.f32 0.5, %v1676_v24  ;;  %v1747_v30 = vpop.f32.mrb[70].mxu1 }
 0x239   :  { %2360 = vrcp.f32 %v1926_v20  ;;  %v1927_v31 = vadd.f32 1e-06, %v1881_v23  ;;  %v1767_v32 = vmul.f32 0.5, %v1747_v30  ;;  %v1678_v34 = vpop.f32.mrb[71].mxu0  ;;  %v1975_v33 = vmax.f32 %v1881_v23, 1e-10 }
 0x23a   :  { %2362 = vlog2.f32 %v1974_v22  ;;  %v1929_v35 = vadd.f32 1e-06, %v1893_v27  ;;  %v1786_v36 = vsub.f32 %v2851_v21, %v1765_v29  ;;  %v1749_v3 = vpop.f32.mrb[71].mxu1  ;;  %v1766_v42 = vmul.f32 0.5, %v1678_v34 }
 0x23b   :  { %2364 = vrcp.f32 %v1928_v25  ;;  %v1788_v40 = vsub.f32 %v2851_v21, %v1767_v32  ;;  %v1768_v43 = vmul.f32 0.5, %v1749_v3  ;;  %v1977_v44 = vmax.f32 %v1893_v27, 1e-10 }
 0x23c   :  { %2366 = vlog2.f32 %v1976_v26  ;;  %v1814_v45 = vmul.f32 1.442695, %v1786_v36  ;;  %v1787_v46 = vsub.f32 %v2851_v21, %v1766_v42 }
 0x23d   :  { %2368 = vrcp.f32 %v1927_v31  ;;  %v1789_v37 = vsub.f32 %v2851_v21, %v1768_v43  ;;  %v1818_v48 = vmul.f32 1.442695, %v1788_v40 }
 0x23e   :  { %2370 = vlog2.f32 %v1975_v33  ;;  %v1816_v39 = vmul.f32 1.442695, %v1787_v46 }
 0x23f   :  { %2372 = vrcp.f32 %v1929_v35  ;;  %v1820_v41 = vmul.f32 1.442695, %v1789_v37 }
 0x240   :  { %2374 = vlog2.f32 %v1977_v44 }
 0x241   :  { %2376 = vpow2.f32 %v1814_v45 }
 0x242   :  { %2378 = vpow2.f32 %v1818_v48 }
 0x243   :  { %v2361_v50 = vpop.eup %2360  ;;  %2380 = vpow2.f32 %v1816_v39 }
 0x244   :  { %v2363_v51 = vpop.eup %2362  ;;  %v1958_v53 = vmul.f32 %v2361_v50, %v2938_v56  ;;  %2382 = vpow2.f32 %v1820_v41 }
 0x245   :  { %v2365_v47 = vpop.eup %2364  ;;  %v1999_v54 = vmul.f32 0.6931472, %v2363_v51 }
 0x246   :  { %v2367_v55 = vpop.eup %2366  ;;  %v1960_v38 = vmul.f32 %v2365_v47, %v2942_v59 }
 0x247   :  { %v2369_v21 = vpop.eup %2368  ;;  %v2025_v57 = vsel %vm2016_vm3, %v1999_v54, %v1958_v53  ;;  %v2003_v58 = vmul.f32 0.6931472, %v2367_v55 }
 0x248   :  { %v2371_v49 = vpop.eup %2370  ;;  %2041 = vst [vmem:[%s3016_s4 + $0x40] sm:$0xff] %v2025_v57  ;;  %v1959_v61 = vmul.f32 %v2369_v21, %v2948_v60 }
 0x249   :  { %v2373_v52 = vpop.eup %2372  ;;  %v2027_v56 = vsel %vm2016_vm3, %v2003_v58, %v1960_v38  ;;  %v2001_v63 = vmul.f32 0.6931472, %v2371_v49 }
 0x24a   :  { %v2375_v0 = vpop.eup %2374  ;;  %2043 = vst [vmem:[%s3016_s4 + $0x50] sm:$0xff] %v2027_v56  ;;  %v1961_v59 = vmul.f32 %v2373_v52, %v2953_v62 }
 0x24b   :  { %v2377_v1 = vpop.eup %2376  ;;  %v2026_v2 = vsel %vm2016_vm3, %v2001_v63, %v1959_v61  ;;  %v2005_v4 = vmul.f32 0.6931472, %v2375_v0 }
 0x24c   :  { %v2379_v5 = vpop.eup %2378  ;;  %2042 = vst [vmem:[%s3016_s4 + $0x48] sm:$0xff] %v2026_v2  ;;  %v1894_v60 = vrot.slane %v2377_v1, 4 }
 0x24d   :  { %v2381_v6 = vpop.eup %2380  ;;  %v2028_v7 = vsel %vm2016_vm3, %v2005_v4, %v1961_v59  ;;  %v1906_v8 = vrot.slane %v2379_v5, 4 }
 0x24e   :  { %v2383_v9 = vpop.eup %2382  ;;  %2044 = vst [vmem:[%s3016_s4 + $0x58] sm:$0xff] %v2028_v7  ;;  %v1895_v62 = vadd.f32 %v2377_v1, %v1894_v60  ;;  %v1900_v10 = vrot.slane %v2381_v6, 4 }
 0x24f   :  { %v1907_v11 = vadd.f32 %v2379_v5, %v1906_v8  ;;  %v1912_v12 = vrot.slane %v2383_v9, 4 }
 0x250   :  { %v1896_v13 = vrot.slane %v1895_v62, 2  ;;  %v1901_v14 = vadd.f32 %v2381_v6, %v1900_v10 }
 0x251   :  { %v1908_v15 = vrot.slane %v1907_v11, 2  ;;  %v1913_v16 = vadd.f32 %v2383_v9, %v1912_v12 }
 0x252   :  { %v1897_v17 = vadd.f32 %v1896_v13, %v1895_v62  ;;  %v1902_v18 = vrot.slane %v1901_v14, 2 }
 0x253   :  { %v1909_v19 = vadd.f32 %v1908_v15, %v1907_v11  ;;  %v1914_v20 = vrot.slane %v1913_v16, 2 }
 0x254   :  { %v1898_v22 = vrot.slane %v1897_v17, 1  ;;  %v1903_v23 = vadd.f32 %v1902_v18, %v1901_v14 }
 0x255   :  { %v1910_v24 = vrot.slane %v1909_v19, 1  ;;  %v1915_v25 = vadd.f32 %v1914_v20, %v1913_v16 }
 0x256   :  { %v1899_v26 = vadd.f32 %v1898_v22, %v1897_v17  ;;  %v1904_v27 = vrot.slane %v1903_v23, 1 }
 0x257   :  { %v1911_v29 = vadd.f32 %v1910_v24, %v1909_v19  ;;  %v1916_v30 = vrot.slane %v1915_v25, 1 }
 0x258   :  { %v1930_v31 = vadd.f32 1e-06, %v1899_v26  ;;  %v1978_v32 = vmax.f32 %v1899_v26, 1e-10  ;;  %v1905_v34 = vadd.f32 %v1904_v27, %v1903_v23 }
 0x259   :  { %v1932_v33 = vadd.f32 1e-06, %v1911_v29  ;;  %v1980_v35 = vmax.f32 %v1911_v29, 1e-10  ;;  %v1917_v36 = vadd.f32 %v1916_v30, %v1915_v25 }
 0x25a   :  { %2384 = vrcp.f32 %v1930_v31  ;;  %v1931_v3 = vadd.f32 1e-06, %v1905_v34  ;;  %v1979_v40 = vmax.f32 %v1905_v34, 1e-10 }
 0x25b   :  { %2386 = vlog2.f32 %v1978_v32  ;;  %v1933_v42 = vadd.f32 1e-06, %v1917_v36  ;;  %v1981_v43 = vmax.f32 %v1917_v36, 1e-10 }
 0x25c   :  { %2388 = vrcp.f32 %v1932_v33 }
 0x25d   :  { %2390 = vlog2.f32 %v1980_v35 }
 0x25e   :  { %2392 = vrcp.f32 %v1931_v3 }
 0x25f   :  { %2394 = vlog2.f32 %v1979_v40 }
 0x260   :  { %2396 = vrcp.f32 %v1933_v42 }
 0x261   :  { %2398 = vlog2.f32 %v1981_v43 }
 0x264   :  { %v2385_v44 = vpop.eup %2384 }
 0x265   :  { %v2387_v45 = vpop.eup %2386  ;;  %v1962_v46 = vmul.f32 %v2385_v44, %v2377_v1 }
 0x266   :  { %v2389_v37 = vpop.eup %2388  ;;  %v2007_v48 = vmul.f32 0.6931472, %v2387_v45 }
 0x267   :  { %v2391_v39 = vpop.eup %2390  ;;  %v1964_v41 = vmul.f32 %v2389_v37, %v2379_v5 }
 0x268   :  { %v2393_v50 = vpop.eup %2392  ;;  %v2029_v51 = vsel %vm2016_vm3, %v2007_v48, %v1962_v46  ;;  %v2011_v53 = vmul.f32 0.6931472, %v2391_v39 }
 0x269   :  { %v2395_v47 = vpop.eup %2394  ;;  %2045 = vst [vmem:[%s3016_s4 + $0x60] sm:$0xff] %v2029_v51  ;;  %v1963_v54 = vmul.f32 %v2393_v50, %v2381_v6 }
 0x26a   :  { %v2397_v55 = vpop.eup %2396  ;;  %v2031_v38 = vsel %vm2016_vm3, %v2011_v53, %v1964_v41  ;;  %v2009_v21 = vmul.f32 0.6931472, %v2395_v47 }
 0x26b   :  { %v2399_v57 = vpop.eup %2398  ;;  %2047 = vst [vmem:[%s3016_s4 + $0x70] sm:$0xff] %v2031_v38  ;;  %v1965_v58 = vmul.f32 %v2397_v55, %v2383_v9 }
 0x26c   :  { %v2030_v49 = vsel %vm2016_vm3, %v2009_v21, %v1963_v54  ;;  %v2013_v61 = vmul.f32 0.6931472, %v2399_v57 }
 0x26d   :  { %2046 = vst [vmem:[%s3016_s4 + $0x68] sm:$0xff] %v2030_v49 }
 0x26e   :  { %v2032_v52 = vsel %vm2016_vm3, %v2013_v61, %v1965_v58 }
 0x26f   :  { %2048 = vst [vmem:[%s3016_s4 + $0x78] sm:$0xff] %v2032_v52 }

</bundles_post_ra>
